<compile_context>
chip_gen: v7x
topology: tpu7x:2x2x1
jax: 0.10.0
libtpu: 0.0.40
codegen_flags: <defaults>
</compile_context>

<pallas_src>
import jax
import jax.numpy as jnp
from jax.experimental import pallas as pl
from jax.experimental.pallas import tpu as pltpu

IN_FEATURES = 1000  # fixed by the module definition
_LANE = 128
_SUBLANE = 8


# ----------------------------------------------------------------------------
# helpers
# ----------------------------------------------------------------------------
def _round_up(x, m):
    return ((x + m - 1) // m) * m


def _pad2(a, rows, cols):
    return jnp.pad(a, ((0, rows - a.shape[0]), (0, cols - a.shape[1])))


def _pick_tile(total, unit, max_tile):
    """Largest multiple of `unit` that is <= max_tile and divides `total`."""
    t = min(total, max_tile)
    t -= t % unit
    t = max(t, unit)
    while total % t != 0:
        t -= unit
    return t


def _vmem_capacity_bytes():
    """Physical VMEM of this TPU generation (128 MiB v5e/v6e, 64 MiB v7x)."""
    try:
        return int(pltpu.get_tpu_info().vmem_capacity_bytes)
    except Exception:
        return 64 * 1024 * 1024  # conservative (v7x-sized) fallback


def _vmem_footprint_bytes(tb, tn2, k_p, n1_p, itemsize):
    """Conservative VMEM footprint: every block double-buffered + x1 scratch."""
    u = 2 * tb * k_p * itemsize          # x tile
    u += 2 * k_p * n1_p * itemsize       # W1^T   (counted double-buffered even
    u += 2 * n1_p * 4                    # b1      if Buffered(1) is granted)
    u += 2 * k_p * tn2 * itemsize        # W2a^T tile
    u += 2 * n1_p * tn2 * itemsize       # W2b^T tile
    u += 2 * tn2 * 4                     # b2 tile
    u += 2 * tb * n1_p * 4               # x1 output (f32)
    u += 2 * tb * tn2 * 4                # x2 output tile (f32)
    u += tb * n1_p * itemsize            # x1 scratch (resident variant)
    return u


def _choose_tiles(b_p, n2_p, k_p, n1_p, itemsize, budget):
    tb = _pick_tile(b_p, _SUBLANE, 512)
    tn2 = _pick_tile(n2_p, _LANE, 1024 if itemsize <= 2 else 512)
    while (_vmem_footprint_bytes(tb, tn2, k_p, n1_p, itemsize) > budget
           and (tn2 > _LANE or tb > _SUBLANE)):
        if tn2 > _LANE:
            tn2 = _pick_tile(n2_p, _LANE, max(_LANE, tn2 // 2))
        else:
            tb = _pick_tile(b_p, _SUBLANE, max(_SUBLANE, tb // 2))
    usage = _vmem_footprint_bytes(tb, tn2, k_p, n1_p, itemsize)
    if usage > budget:
        # TODO(synk): add an n1 accumulation/tiling grid axis so very large
        # num_lev1 fits v7x's 64 MiB VMEM.
        raise ValueError(
            f"num_lev1 padded to {n1_p} does not fit the VMEM budget "
            f"({budget} bytes) even at minimal tiles; n1 tiling is not "
            f"implemented.")
    return tb, tn2, usage


# ----------------------------------------------------------------------------
# kernels
# ----------------------------------------------------------------------------
def _kernel_resident(x_ref, w1_ref, b1_ref, w2a_ref, w2b_ref, b2_ref,
                     x1_out_ref, x2_out_ref, x1_scr_ref):
    """Grid (batch tiles i, lev2 tiles j); j sequential ("arbitrary").

    x1 for this batch tile is computed once (j == 0), written to its resident
    output block and cached in a compute-dtype scratch reused by every j."""
    @pl.when(pl.program_id(1) == 0)
    def _():
        x1 = jnp.dot(x_ref[...], w1_ref[...],
                     preferred_element_type=jnp.float32) + b1_ref[...]
        x1_out_ref[...] = x1.astype(x1_out_ref.dtype)
        x1_scr_ref[...] = x1.astype(x1_scr_ref.dtype)

    x2 = jnp.dot(x_ref[...], w2a_ref[...], preferred_element_type=jnp.float32)
    x2 = x2 + jnp.dot(x1_scr_ref[...], w2b_ref[...],
                      preferred_element_type=jnp.float32)
    x2_out_ref[...] = (x2 + b2_ref[...]).astype(x2_out_ref.dtype)


def _kernel_recompute(x_ref, w1_ref, b1_ref, w2a_ref, w2b_ref, b2_ref,
                      x1_out_ref, x2_out_ref):
    """No cross-step dependency: x1 is recomputed (cheap) at every lev2 tile,
    so both grid axes can be "parallel" and the lev2 axis can be sharded
    across TensorCores (v7x) when the batch grid collapses to one tile.
    Every step writes identical x1 data, so the repeated writeback is benign."""
    x1 = jnp.dot(x_ref[...], w1_ref[...],
                 preferred_element_type=jnp.float32) + b1_ref[...]
    x1_out_ref[...] = x1.astype(x1_out_ref.dtype)
    x2 = jnp.dot(x_ref[...], w2a_ref[...], preferred_element_type=jnp.float32)
    x2 = x2 + jnp.dot(x1.astype(w2b_ref.dtype), w2b_ref[...],
                      preferred_element_type=jnp.float32)
    x2_out_ref[...] = (x2 + b2_ref[...]).astype(x2_out_ref.dtype)


# ----------------------------------------------------------------------------
# one-time parameter preprocessing (OUTSIDE the per-call hot path)
# ----------------------------------------------------------------------------
def prepare_params(w1, b1, w2, b2, compute_dtype=jnp.bfloat16):
    """Transpose to (K, N), zero-pad K->1024 and N->multiples of 128, split
    lev2's weight into its x-part / x1-part, and cast to `compute_dtype`
    (default bf16 storage; f32 MXU accumulation is kept in the kernel)."""
    n1, k = w1.shape
    n2, k2 = w2.shape
    assert k == IN_FEATURES and k2 == IN_FEATURES + n1
    assert b1.shape == (n1,) and b2.shape == (n2,)

    k_p = _round_up(IN_FEATURES, _LANE)    # 1024
    n1_p = _round_up(n1, _LANE)
    n2_p = _round_up(n2, _LANE)

    w2a = w2[:, :IN_FEATURES]              # acts on x
    w2b = w2[:, IN_FEATURES:]              # acts on x1

    return {
        "num_lev1": n1,
        "num_lev2": n2,
        "w1t": _pad2(w1.T, k_p, n1_p).astype(compute_dtype),     # (K_p, N1_p)
        "b1": jnp.pad(b1, (0, n1_p - n1)).reshape(1, n1_p).astype(jnp.float32),
        "w2at": _pad2(w2a.T, k_p, n2_p).astype(compute_dtype),   # (K_p, N2_p)
        "w2bt": _pad2(w2b.T, n1_p, n2_p).astype(compute_dtype),  # (N1_p, N2_p)
        "b2": jnp.pad(b2, (0, n2_p - n2)).reshape(1, n2_p).astype(jnp.float32),
    }


# ----------------------------------------------------------------------------
# pallas_call builder
# ----------------------------------------------------------------------------
def _run_pallas(x_p, w1t, b1, w2at, w2bt, b2, *, tb, tn2,
                single_buffer_invariants, split_lev2, vmem_limit, cost):
    b_p, k_p = x_p.shape
    n1_p = w1t.shape[1]
    n2_p = w2at.shape[1]
    compute_dtype = w1t.dtype
    grid = (b_p // tb, n2_p // tn2)

    def spec(shape, index_map, single_buffer=False):
        if single_buffer:
            # Invariant block: second pipeline buffer is wasted VMEM.
            return pl.BlockSpec(shape, index_map, pipeline_mode=pl.Buffered(1))
        return pl.BlockSpec(shape, index_map)

    sb = single_buffer_invariants
    in_specs = [
        spec((tb, k_p), lambda i, j: (i, 0)),          # x tile
        spec((k_p, n1_p), lambda i, j: (0, 0), sb),    # W1^T (grid-invariant)
        spec((1, n1_p), lambda i, j: (0, 0), sb),      # b1   (grid-invariant)
        spec((k_p, tn2), lambda i, j: (0, j)),         # W2a^T tile
        spec((n1_p, tn2), lambda i, j: (0, j)),        # W2b^T tile
        spec((1, tn2), lambda i, j: (0, j)),           # b2 tile
    ]
    out_specs = [
        pl.BlockSpec((tb, n1_p), lambda i, j: (i, 0)),  # x1 (resident over j)
        pl.BlockSpec((tb, tn2), lambda i, j: (i, j)),   # x2 tile (lane-dense)
    ]

    if split_lev2:
        kernel = _kernel_recompute
        scratch = []
        semantics = ("parallel", "parallel")
    else:
        kernel = _kernel_resident
        scratch = [pltpu.VMEM((tb, n1_p), compute_dtype)]  # x1 cache, compute dtype
        semantics = ("parallel", "arbitrary")

    return pl.pallas_call(
        kernel,
        out_shape=(
            jax.ShapeDtypeStruct((b_p, n1_p), jnp.float32),
            jax.ShapeDtypeStruct((b_p, n2_p), jnp.float32),
        ),
        grid_spec=pltpu.PrefetchScalarGridSpec(
            num_scalar_prefetch=0,
            grid=grid,
            in_specs=in_specs,
            out_specs=out_specs,
            scratch_shapes=scratch),
        compiler_params=pltpu.CompilerParams(
            dimension_semantics=semantics,
            vmem_limit_bytes=int(vmem_limit)),
        cost_estimate=cost,
    )(x_p, w1t, b1, w2at, w2bt, b2)


# ----------------------------------------------------------------------------
# forward pass
# ----------------------------------------------------------------------------
def two_level_forward(x, params):
    """x: (B, 1000) float32 -> (B, num_lev1 + num_lev2) float32."""
    b, k = x.shape
    assert k == IN_FEATURES
    n1, n2 = params["num_lev1"], params["num_lev2"]
    w1t, b1 = params["w1t"], params["b1"]
    w2at, w2bt, b2 = params["w2at"], params["w2bt"], params["b2"]
    k_p, n1_p = w1t.shape
    n2_p = w2at.shape[1]
    compute_dtype = w1t.dtype
    isz = jnp.dtype(compute_dtype).itemsize

    b_p = _round_up(b, _SUBLANE)
    x_p = _pad2(x, b_p, k_p).astype(compute_dtype)   # zero-pad K -> 1024

    # Per-generation tile selection / VMEM budget (v5e/v6e 128 MiB, v7x 64 MiB).
    capacity = _vmem_capacity_bytes()
    budget = int(capacity * 0.70)
    tb, tn2, usage = _choose_tiles(b_p, n2_p, k_p, n1_p, isz, budget)
    n_i, n_j = b_p // tb, n2_p // tn2
    vmem_limit = min(int(capacity * 0.90), max(2 * usage, 32 * 1024 * 1024))

    # One batch tile + several lev2 tiles: shard the lev2 axis across cores.
    split_lev2 = (n_i == 1 and n_j > 1)

    # Cost estimate reflecting actual HBM traffic: W2a/W2b are re-streamed once
    # per batch tile whenever there is more than one lev2 tile.
    w2_streams = n_i if n_j > 1 else 1
    x1_flops = 2 * b_p * k_p * n1_p * (n_j if split_lev2 else 1)
    flops = x1_flops + 2 * b_p * (k_p + n1_p) * n2_p
    bytes_accessed = (
        b_p * k_p * isz                                  # x (once per batch tile)
        + k_p * n1_p * isz                               # W1 (fetched once)
        + w2_streams * (k_p + n1_p) * n2_p * isz         # W2a + W2b re-streams
        + (n1_p + n2_p) * 4                              # biases (f32)
        + b_p * (n1_p + n2_p) * 4                        # outputs (f32)
    )
    cost = pl.CostEstimate(flops=int(flops), transcendentals=0,
                           bytes_accessed=int(bytes_accessed))

    try:
        x1_p, x2_p = _run_pallas(
            x_p, w1t, b1, w2at, w2bt, b2, tb=tb, tn2=tn2,
            single_buffer_invariants=True, split_lev2=split_lev2,
            vmem_limit=vmem_limit, cost=cost)
    except Exception:
        # Conservative fallback (identical structure to the proven baseline):
        # double-buffered invariant blocks, resident x1, sequential lev2 axis.
        x1_p, x2_p = _run_pallas(
            x_p, w1t, b1, w2at, w2bt, b2, tb=tb, tn2=tn2,
            single_buffer_invariants=False, split_lev2=False,
            vmem_limit=vmem_limit, cost=cost)

    # Un-pad and produce cat(x1, x2) — a cheap XLA slice/concat on the output.
    return jnp.concatenate([x1_p[:b, :n1], x2_p[:b, :n2]], axis=1)


# ----------------------------------------------------------------------------
# reference + init
# ----------------------------------------------------------------------------
def reference_forward(x, w1, b1, w2, b2):
    x1 = x @ w1.T + b1
    x2 = jnp.concatenate([x, x1], axis=1) @ w2.T + b2
    return jnp.concatenate([x1, x2], axis=1)


def init_params(key, num_lev1, num_lev2):
    """nn.Linear default init: U(-1/sqrt(fan_in), 1/sqrt(fan_in))."""
    k1w, k1b, k2w, k2b = jax.random.split(key, 4)
    bound1 = 1.0 / (IN_FEATURES ** 0.5)
    fan2 = IN_FEATURES + num_lev1
    bound2 = 1.0 / (fan2 ** 0.5)
    w1 = jax.random.uniform(k1w, (num_lev1, IN_FEATURES), jnp.float32, -bound1, bound1)
    b1 = jax.random.uniform(k1b, (num_lev1,), jnp.float32, -bound1, bound1)
    w2 = jax.random.uniform(k2w, (num_lev2, fan2), jnp.float32, -bound2, bound2)
    b2 = jax.random.uniform(k2b, (num_lev2,), jnp.float32, -bound2, bound2)
    return w1, b1, w2, b2


if __name__ == "__main__":
    root_key = jax.random.PRNGKey(0)

    def check(batch, n1, n2, compute_dtype, atol, rtol=0.0):
        key = jax.random.fold_in(root_key, batch * 131 + n1 * 7 + n2)
        k_x, k_p = jax.random.split(key)
        x = jax.random.normal(k_x, (batch, IN_FEATURES), jnp.float32)
        w1, b1, w2, b2 = init_params(k_p, n1, n2)
        ref = reference_forward(x, w1, b1, w2, b2)
        params = prepare_params(w1, b1, w2, b2, compute_dtype=compute_dtype)
        out = jax.block_until_ready(two_level_forward(x, params))
        assert out.shape == (batch, n1 + n2)
        assert bool(jnp.allclose(out, ref, atol=atol, rtol=rtol)), (
            f"mismatch (batch={batch}, n1={n1}, n2={n2}, dtype={compute_dtype})")

    # Small config, both dtype paths (bf16 storage is the default).
    check(8, 16, 32, jnp.bfloat16, atol=6e-2)
    check(8, 16, 32, jnp.float32, atol=2e-2, rtol=1e-3)
    # One batch tile, several lev2 tiles -> recompute-x1 / dual-parallel variant.
    check(8, 16, 2048, jnp.bfloat16, atol=8e-2)
    # Several batch tiles and lev2 tiles -> resident-x1 variant, W2 re-stream.
    check(1024, 24, 1152, jnp.bfloat16, atol=8e-2)

    print("KERNEL_OK")
</pallas_src>

<mosaic_0001>
module attributes {stable_mosaic.version = 11 : i64} {
  func.func @_kernel_resident(%arg0: i32, %arg1: i32, %arg2: memref<8x1024xbf16, #tpu.memory_space<vmem>>, %arg3: memref<1024x128xbf16, #tpu.memory_space<vmem>>, %arg4: memref<1x128xf32, #tpu.memory_space<vmem>>, %arg5: memref<1024x128xbf16, #tpu.memory_space<vmem>>, %arg6: memref<128x128xbf16, #tpu.memory_space<vmem>>, %arg7: memref<1x128xf32, #tpu.memory_space<vmem>>, %arg8: memref<8x128xf32, #tpu.memory_space<vmem>>, %arg9: memref<8x128xf32, #tpu.memory_space<vmem>>, %arg10: memref<8x128xbf16, #tpu.memory_space<vmem>>) attributes {dimension_semantics = [#tpu.dimension_semantics<parallel>, #tpu.dimension_semantics<arbitrary>], iteration_bounds = array<i64: 1, 1>, scalar_prefetch = 0 : i64, scratch_operands = 1 : i64, tpu.core_type = #tpu.core_type<tc>, window_params = [{transform_indices = @transform_0, window_bounds = array<i64: 8, 1024>}, {pipeline_mode = #tpu.pipeline_mode<synchronous>, transform_indices = @transform_1, window_bounds = array<i64: 1024, 128>}, {pipeline_mode = #tpu.pipeline_mode<synchronous>, transform_indices = @transform_2, window_bounds = array<i64: 1, 128>}, {transform_indices = @transform_3, window_bounds = array<i64: 1024, 128>}, {transform_indices = @transform_4, window_bounds = array<i64: 128, 128>}, {transform_indices = @transform_5, window_bounds = array<i64: 1, 128>}, {transform_indices = @transform_6, window_bounds = array<i64: 8, 128>}, {transform_indices = @transform_7, window_bounds = array<i64: 8, 128>}]} {
    %c0_i32 = arith.constant 0 : i32
    %0 = arith.cmpi eq, %arg1, %c0_i32 : i32
    %1 = arith.extui %0 : i1 to i32
    %c0_i32_0 = arith.constant 0 : i32
    %2 = arith.cmpi ne, %1, %c0_i32_0 : i32
    scf.if %2 {
      %c0_13 = arith.constant 0 : index
      %c0_14 = arith.constant 0 : index
      %14 = vector.load %arg2[%c0_13, %c0_14] : memref<8x1024xbf16, #tpu.memory_space<vmem>>, vector<8x1024xbf16>
      %c0_15 = arith.constant 0 : index
      %c0_16 = arith.constant 0 : index
      %15 = vector.load %arg3[%c0_15, %c0_16] : memref<1024x128xbf16, #tpu.memory_space<vmem>>, vector<1024x128xbf16>
      %cst_17 = arith.constant dense<0.000000e+00> : vector<8x128xf32>
      %16 = tpu.matmul %14, %15, %cst_17 {dimension_numbers = #tpu.dot_dimension_numbers<[1], [0], [0], [1], [0, 0, 1, 1], [], []>} : vector<8x1024xbf16>, vector<1024x128xbf16>, vector<8x128xf32> -> vector<8x128xf32>
      %c0_18 = arith.constant 0 : index
      %c0_19 = arith.constant 0 : index
      %17 = vector.load %arg4[%c0_18, %c0_19] : memref<1x128xf32, #tpu.memory_space<vmem>>, vector<1x128xf32>
      %18 = vector.broadcast %17 : vector<1x128xf32> to vector<8x128xf32>
      %19 = arith.addf %16, %18 : vector<8x128xf32>
      %c0_20 = arith.constant 0 : index
      %c0_21 = arith.constant 0 : index
      %20 = vector.load %arg8[%c0_20, %c0_21] : memref<8x128xf32, #tpu.memory_space<vmem>>, vector<8x128xf32>
      tpu.vector_store %arg8[%c0_20, %c0_21], %19 {strides = array<i32>} : memref<8x128xf32, #tpu.memory_space<vmem>>, vector<8x128xf32>,
      %21 = arith.truncf %19 : vector<8x128xf32> to vector<8x128xbf16>
      %c0_22 = arith.constant 0 : index
      %c0_23 = arith.constant 0 : index
      %22 = vector.load %arg10[%c0_22, %c0_23] : memref<8x128xbf16, #tpu.memory_space<vmem>>, vector<8x128xbf16>
      tpu.vector_store %arg10[%c0_22, %c0_23], %21 {strides = array<i32>} : memref<8x128xbf16, #tpu.memory_space<vmem>>, vector<8x128xbf16>,
    } else {
    }
    %c0 = arith.constant 0 : index
    %c0_1 = arith.constant 0 : index
    %3 = vector.load %arg2[%c0, %c0_1] : memref<8x1024xbf16, #tpu.memory_space<vmem>>, vector<8x1024xbf16>
    %c0_2 = arith.constant 0 : index
    %c0_3 = arith.constant 0 : index
    %4 = vector.load %arg5[%c0_2, %c0_3] : memref<1024x128xbf16, #tpu.memory_space<vmem>>, vector<1024x128xbf16>
    %cst = arith.constant dense<0.000000e+00> : vector<8x128xf32>
    %5 = tpu.matmul %3, %4, %cst {dimension_numbers = #tpu.dot_dimension_numbers<[1], [0], [0], [1], [0, 0, 1, 1], [], []>} : vector<8x1024xbf16>, vector<1024x128xbf16>, vector<8x128xf32> -> vector<8x128xf32>
    %c0_4 = arith.constant 0 : index
    %c0_5 = arith.constant 0 : index
    %6 = vector.load %arg10[%c0_4, %c0_5] : memref<8x128xbf16, #tpu.memory_space<vmem>>, vector<8x128xbf16>
    %c0_6 = arith.constant 0 : index
    %c0_7 = arith.constant 0 : index
    %7 = vector.load %arg6[%c0_6, %c0_7] : memref<128x128xbf16, #tpu.memory_space<vmem>>, vector<128x128xbf16>
    %cst_8 = arith.constant dense<0.000000e+00> : vector<8x128xf32>
    %8 = tpu.matmul %6, %7, %cst_8 {dimension_numbers = #tpu.dot_dimension_numbers<[1], [0], [0], [1], [0, 0, 1, 1], [], []>} : vector<8x128xbf16>, vector<128x128xbf16>, vector<8x128xf32> -> vector<8x128xf32>
    %9 = arith.addf %5, %8 : vector<8x128xf32>
    %c0_9 = arith.constant 0 : index
    %c0_10 = arith.constant 0 : index
    %10 = vector.load %arg7[%c0_9, %c0_10] : memref<1x128xf32, #tpu.memory_space<vmem>>, vector<1x128xf32>
    %11 = vector.broadcast %10 : vector<1x128xf32> to vector<8x128xf32>
    %12 = arith.addf %9, %11 : vector<8x128xf32>
    %c0_11 = arith.constant 0 : index
    %c0_12 = arith.constant 0 : index
    %13 = vector.load %arg9[%c0_11, %c0_12] : memref<8x128xf32, #tpu.memory_space<vmem>>, vector<8x128xf32>
    tpu.vector_store %arg9[%c0_11, %c0_12], %12 {strides = array<i32>} : memref<8x128xf32, #tpu.memory_space<vmem>>, vector<8x128xf32>,
    return
  }
  func.func @transform_0(%arg0: i32, %arg1: i32) -> (i32, i32) {
    %c0_i32 = arith.constant 0 : i32
    %c0_i32_0 = arith.constant 0 : i32
    return %arg0, %c0_i32 : i32, i32
  }
  func.func @transform_1(%arg0: i32, %arg1: i32) -> (i32, i32) {
    %c0_i32 = arith.constant 0 : i32
    %c0_i32_0 = arith.constant 0 : i32
    %c0_i32_1 = arith.constant 0 : i32
    return %c0_i32, %c0_i32_0 : i32, i32
  }
  func.func @transform_2(%arg0: i32, %arg1: i32) -> (i32, i32) {
    %c0_i32 = arith.constant 0 : i32
    %c0_i32_0 = arith.constant 0 : i32
    %c0_i32_1 = arith.constant 0 : i32
    return %c0_i32, %c0_i32_0 : i32, i32
  }
  func.func @transform_3(%arg0: i32, %arg1: i32) -> (i32, i32) {
    %c0_i32 = arith.constant 0 : i32
    %c0_i32_0 = arith.constant 0 : i32
    return %c0_i32, %arg1 : i32, i32
  }
  func.func @transform_4(%arg0: i32, %arg1: i32) -> (i32, i32) {
    %c0_i32 = arith.constant 0 : i32
    %c0_i32_0 = arith.constant 0 : i32
    return %c0_i32, %arg1 : i32, i32
  }
  func.func @transform_5(%arg0: i32, %arg1: i32) -> (i32, i32) {
    %c0_i32 = arith.constant 0 : i32
    %c0_i32_0 = arith.constant 0 : i32
    return %c0_i32, %arg1 : i32, i32
  }
  func.func @transform_6(%arg0: i32, %arg1: i32) -> (i32, i32) {
    %c0_i32 = arith.constant 0 : i32
    %c0_i32_0 = arith.constant 0 : i32
    return %arg0, %c0_i32 : i32, i32
  }
  func.func @transform_7(%arg0: i32, %arg1: i32) -> (i32, i32) {
    %c0_i32 = arith.constant 0 : i32
    return %arg0, %arg1 : i32, i32
  }
}

module attributes {stable_mosaic.version = 11 : i64} {
  func.func @_kernel_resident(%arg0: i32, %arg1: i32, %arg2: memref<8x1024xbf16, #tpu.memory_space<vmem>>, %arg3: memref<1024x128xbf16, #tpu.memory_space<vmem>>, %arg4: memref<1x128xf32, #tpu.memory_space<vmem>>, %arg5: memref<1024x128xbf16, #tpu.memory_space<vmem>>, %arg6: memref<128x128xbf16, #tpu.memory_space<vmem>>, %arg7: memref<1x128xf32, #tpu.memory_space<vmem>>, %arg8: memref<8x128xf32, #tpu.memory_space<vmem>>, %arg9: memref<8x128xf32, #tpu.memory_space<vmem>>, %arg10: memref<8x128xbf16, #tpu.memory_space<vmem>>) attributes {dimension_semantics = [#tpu.dimension_semantics<parallel>, #tpu.dimension_semantics<arbitrary>], iteration_bounds = array<i64: 1, 1>, scalar_prefetch = 0 : i64, scratch_operands = 1 : i64, tpu.core_type = #tpu.core_type<tc>, window_params = [{transform_indices = @transform_0, window_bounds = array<i64: 8, 1024>}, {pipeline_mode = #tpu.pipeline_mode<synchronous>, transform_indices = @transform_1, window_bounds = array<i64: 1024, 128>}, {pipeline_mode = #tpu.pipeline_mode<synchronous>, transform_indices = @transform_2, window_bounds = array<i64: 1, 128>}, {transform_indices = @transform_3, window_bounds = array<i64: 1024, 128>}, {transform_indices = @transform_4, window_bounds = array<i64: 128, 128>}, {transform_indices = @transform_5, window_bounds = array<i64: 1, 128>}, {transform_indices = @transform_6, window_bounds = array<i64: 8, 128>}, {transform_indices = @transform_7, window_bounds = array<i64: 8, 128>}]} {
    %c0_i32 = arith.constant 0 : i32
    %0 = arith.cmpi eq, %arg1, %c0_i32 : i32
    %1 = arith.extui %0 : i1 to i32
    %c0_i32_0 = arith.constant 0 : i32
    %2 = arith.cmpi ne, %1, %c0_i32_0 : i32
    scf.if %2 {
      %c0_13 = arith.constant 0 : index
      %c0_14 = arith.constant 0 : index
      %14 = vector.load %arg2[%c0_13, %c0_14] : memref<8x1024xbf16, #tpu.memory_space<vmem>>, vector<8x1024xbf16>
      %c0_15 = arith.constant 0 : index
      %c0_16 = arith.constant 0 : index
      %15 = vector.load %arg3[%c0_15, %c0_16] : memref<1024x128xbf16, #tpu.memory_space<vmem>>, vector<1024x128xbf16>
      %cst_17 = arith.constant dense<0.000000e+00> : vector<8x128xf32>
      %16 = tpu.matmul %14, %15, %cst_17 {dimension_numbers = #tpu.dot_dimension_numbers<[1], [0], [0], [1], [0, 0, 1, 1], [], []>} : vector<8x1024xbf16>, vector<1024x128xbf16>, vector<8x128xf32> -> vector<8x128xf32>
      %c0_18 = arith.constant 0 : index
      %c0_19 = arith.constant 0 : index
      %17 = vector.load %arg4[%c0_18, %c0_19] : memref<1x128xf32, #tpu.memory_space<vmem>>, vector<1x128xf32>
      %18 = vector.broadcast %17 : vector<1x128xf32> to vector<8x128xf32>
      %19 = arith.addf %16, %18 : vector<8x128xf32>
      %c0_20 = arith.constant 0 : index
      %c0_21 = arith.constant 0 : index
      %20 = vector.load %arg8[%c0_20, %c0_21] : memref<8x128xf32, #tpu.memory_space<vmem>>, vector<8x128xf32>
      tpu.vector_store %arg8[%c0_20, %c0_21], %19 {strides = array<i32>} : memref<8x128xf32, #tpu.memory_space<vmem>>, vector<8x128xf32>,
      %21 = arith.truncf %19 : vector<8x128xf32> to vector<8x128xbf16>
      %c0_22 = arith.constant 0 : index
      %c0_23 = arith.constant 0 : index
      %22 = vector.load %arg10[%c0_22, %c0_23] : memref<8x128xbf16, #tpu.memory_space<vmem>>, vector<8x128xbf16>
      tpu.vector_store %arg10[%c0_22, %c0_23], %21 {strides = array<i32>} : memref<8x128xbf16, #tpu.memory_space<vmem>>, vector<8x128xbf16>,
    } else {
    }
    %c0 = arith.constant 0 : index
    %c0_1 = arith.constant 0 : index
    %3 = vector.load %arg2[%c0, %c0_1] : memref<8x1024xbf16, #tpu.memory_space<vmem>>, vector<8x1024xbf16>
    %c0_2 = arith.constant 0 : index
    %c0_3 = arith.constant 0 : index
    %4 = vector.load %arg5[%c0_2, %c0_3] : memref<1024x128xbf16, #tpu.memory_space<vmem>>, vector<1024x128xbf16>
    %cst = arith.constant dense<0.000000e+00> : vector<8x128xf32>
    %5 = tpu.matmul %3, %4, %cst {dimension_numbers = #tpu.dot_dimension_numbers<[1], [0], [0], [1], [0, 0, 1, 1], [], []>} : vector<8x1024xbf16>, vector<1024x128xbf16>, vector<8x128xf32> -> vector<8x128xf32>
    %c0_4 = arith.constant 0 : index
    %c0_5 = arith.constant 0 : index
    %6 = vector.load %arg10[%c0_4, %c0_5] : memref<8x128xbf16, #tpu.memory_space<vmem>>, vector<8x128xbf16>
    %c0_6 = arith.constant 0 : index
    %c0_7 = arith.constant 0 : index
    %7 = vector.load %arg6[%c0_6, %c0_7] : memref<128x128xbf16, #tpu.memory_space<vmem>>, vector<128x128xbf16>
    %cst_8 = arith.constant dense<0.000000e+00> : vector<8x128xf32>
    %8 = tpu.matmul %6, %7, %cst_8 {dimension_numbers = #tpu.dot_dimension_numbers<[1], [0], [0], [1], [0, 0, 1, 1], [], []>} : vector<8x128xbf16>, vector<128x128xbf16>, vector<8x128xf32> -> vector<8x128xf32>
    %9 = arith.addf %5, %8 : vector<8x128xf32>
    %c0_9 = arith.constant 0 : index
    %c0_10 = arith.constant 0 : index
    %10 = vector.load %arg7[%c0_9, %c0_10] : memref<1x128xf32, #tpu.memory_space<vmem>>, vector<1x128xf32>
    %11 = vector.broadcast %10 : vector<1x128xf32> to vector<8x128xf32>
    %12 = arith.addf %9, %11 : vector<8x128xf32>
    %c0_11 = arith.constant 0 : index
    %c0_12 = arith.constant 0 : index
    %13 = vector.load %arg9[%c0_11, %c0_12] : memref<8x128xf32, #tpu.memory_space<vmem>>, vector<8x128xf32>
    tpu.vector_store %arg9[%c0_11, %c0_12], %12 {strides = array<i32>} : memref<8x128xf32, #tpu.memory_space<vmem>>, vector<8x128xf32>,
    return
  }
  func.func @transform_0(%arg0: i32, %arg1: i32) -> (i32, i32) {
    %c0_i32 = arith.constant 0 : i32
    %c0_i32_0 = arith.constant 0 : i32
    return %arg0, %c0_i32 : i32, i32
  }
  func.func @transform_1(%arg0: i32, %arg1: i32) -> (i32, i32) {
    %c0_i32 = arith.constant 0 : i32
    %c0_i32_0 = arith.constant 0 : i32
    %c0_i32_1 = arith.constant 0 : i32
    return %c0_i32, %c0_i32_0 : i32, i32
  }
  func.func @transform_2(%arg0: i32, %arg1: i32) -> (i32, i32) {
    %c0_i32 = arith.constant 0 : i32
    %c0_i32_0 = arith.constant 0 : i32
    %c0_i32_1 = arith.constant 0 : i32
    return %c0_i32, %c0_i32_0 : i32, i32
  }
  func.func @transform_3(%arg0: i32, %arg1: i32) -> (i32, i32) {
    %c0_i32 = arith.constant 0 : i32
    %c0_i32_0 = arith.constant 0 : i32
    return %c0_i32, %arg1 : i32, i32
  }
  func.func @transform_4(%arg0: i32, %arg1: i32) -> (i32, i32) {
    %c0_i32 = arith.constant 0 : i32
    %c0_i32_0 = arith.constant 0 : i32
    return %c0_i32, %arg1 : i32, i32
  }
  func.func @transform_5(%arg0: i32, %arg1: i32) -> (i32, i32) {
    %c0_i32 = arith.constant 0 : i32
    %c0_i32_0 = arith.constant 0 : i32
    return %c0_i32, %arg1 : i32, i32
  }
  func.func @transform_6(%arg0: i32, %arg1: i32) -> (i32, i32) {
    %c0_i32 = arith.constant 0 : i32
    %c0_i32_0 = arith.constant 0 : i32
    return %arg0, %c0_i32 : i32, i32
  }
  func.func @transform_7(%arg0: i32, %arg1: i32) -> (i32, i32) {
    %c0_i32 = arith.constant 0 : i32
    return %arg0, %arg1 : i32, i32
  }
}

</mosaic_0001>

<bundles_post_ra>
// kernel: tpu_custom_call.1
= control target key start
LH: loop header
LB: loop body
LE: loop exit
PB: predicated region body
PF: predicated region fallthrough
CT: control target
= control target key end

     0   :  { %13 = vsyncpa [#allocation4], 0  ;;  %s2472_s0 = inlined_call_operand.hbm [shape: bf16[8,1024], index: 0, kind: input, shape index: {}]   ;;  %s2473_s1 = inlined_call_operand.hbm [shape: bf16[1024,128], index: 1, kind: input, shape index: {}]   ;;  %s2474_s2 = inlined_call_operand.vmem [shape: f32[1,128], index: 2, kind: input, shape index: {}]   ;;  %s2475_s3 = inlined_call_operand.hbm [shape: bf16[1024,128], index: 3, kind: input, shape index: {}]   ;;  %s2476_s4 = inlined_call_operand.hbm [shape: bf16[128,128], index: 4, kind: input, shape index: {}]   ;;  %s2477_s5 = inlined_call_operand.vmem [shape: f32[1,128], index: 5, kind: input, shape index: {}]   ;;  %s2478_s6 = inlined_call_operand.hbm [shape: f32[8,128], index: 6, kind: output, shape index: {0}]   ;;  %s2479_s7 = inlined_call_operand.hbm [shape: f32[8,128], index: 7, kind: output, shape index: {1}]  }
   0x1   :  { %14 = vsyncpa [#allocation7], 0 }
   0x2   :  { %15 = vsyncpa [#allocation10], 0 }
   0x3   :  { %16 = vsyncpa [#allocation5], 0 }
   0x4   :  { %17 = vsyncpa [#allocation13], 0  ;;  %s2303_s24 = smov [#allocation6]   ;;  %s2161_s28 = scalar_lea.hbm %s2473_s1, 8192 }
   0x5   :  { %s33_s25 = sshll.u32 %s2303_s24, 4  ;;  %p2162_p0 = scmp.ne.s32.totalorder %s2473_s1, %s2161_s28  ;;  %s34_s25 = int_to_ptr.vmem [resolvable:$true] %s33_s25 }
   0x6   :  { %p2165_p1 = scmp.lt.u32.totalorder %s2161_s28, %s2473_s1 }
   0x8   :  { %p2167_p2 = pnand %p2165_p1, %p2162_p0 }
   0xa   :  { %2170 = shalt.err (!%p2167_p2)
}
   0xb   :  { %s2171_s10 = scalar_lea.vmem %s34_s25, 8192  ;;  %p2176_p4 = scmp.lt.s32.totalorder %s34_s25, %s34_s25 }
   0xc   :  { %p2172_p3 = scmp.ne.s32.totalorder %s34_s25, %s2171_s10  ;;  %p2177_p5 = scmp.lt.s32.totalorder %s2171_s10, %s2171_s10 }
   0xe   :  { %p2178_p6 = por %p2177_p5, %p2176_p4 }
  0x10   :  { %p2179_p7 = pnand %p2178_p6, %p2172_p3 }
  0x12   :  { %2182 = shalt.err (!%p2179_p7)
}
  0x13   :  { %s2304_s11 = smov 64   ;;  %s2305_s12 = smov 4  }
  0x14   :  { %39 = dma.hbm_to_vmem [thread:$0]  %s2473_s1, 8192, %s34_s25, [#allocation7], %s2304_s11, %s2304_s11, %s2305_s12  }
  0x15   :  { %s2306_s15 = smov [#allocation3]   ;;  %s2307_s17 = smov [#allocation8]  }
  0x16   :  { %s24_s16 = sshll.u32 %s2306_s15, 4  ;;  %s47_s18 = sshll.u32 %s2307_s17, 4  ;;  %s25_s16 = int_to_ptr.vmem [resolvable:$true] %s24_s16  ;;  %s48_s18 = int_to_ptr.vmem [resolvable:$true] %s47_s18 }
  0x17   :  { %s2183_s21 = scalar_lea.hbm %s2472_s0, 512 }
  0x18   :  { %p2184_p8 = scmp.ne.s32.totalorder %s2472_s0, %s2183_s21  ;;  %p2187_p9 = scmp.lt.u32.totalorder %s2183_s21, %s2472_s0 }
  0x1a   :  { %p2189_p10 = pnand %p2187_p9, %p2184_p8 }
  0x1c   :  { %2192 = shalt.err (!%p2189_p10)
}
  0x1d   :  { %s2193_s1 = scalar_lea.vmem %s25_s16, 512  ;;  %p2198_p12 = scmp.lt.s32.totalorder %s25_s16, %s25_s16 }
  0x1e   :  { %p2194_p11 = scmp.ne.s32.totalorder %s25_s16, %s2193_s1  ;;  %p2199_p13 = scmp.lt.s32.totalorder %s2193_s1, %s2193_s1 }
  0x20   :  { %p2200_p0 = por %p2199_p13, %p2198_p12 }
  0x22   :  { %p2201_p1 = pnand %p2200_p0, %p2194_p11 }
  0x24   :  { %2204 = shalt.err (!%p2201_p1)
}
  0x25   :  { %27 = dma.hbm_to_vmem [thread:$0]  %s2472_s0, 512, %s25_s16, [#allocation4]  }
  0x26   :  { %s2205_s30 = scalar_lea.hbm %s2475_s3, 8192 }
  0x27   :  { %p2206_p2 = scmp.ne.s32.totalorder %s2475_s3, %s2205_s30  ;;  %p2209_p3 = scmp.lt.u32.totalorder %s2205_s30, %s2475_s3 }
  0x29   :  { %p2211_p4 = pnand %p2209_p3, %p2206_p2 }
  0x2b   :  { %2214 = shalt.err (!%p2211_p4)
}
  0x2c   :  { %s2215_s14 = scalar_lea.vmem %s48_s18, 8192  ;;  %p2220_p6 = scmp.lt.s32.totalorder %s48_s18, %s48_s18 }
  0x2d   :  { %p2216_p5 = scmp.ne.s32.totalorder %s48_s18, %s2215_s14  ;;  %p2221_p7 = scmp.lt.s32.totalorder %s2215_s14, %s2215_s14 }
  0x2f   :  { %p2222_p8 = por %p2221_p7, %p2220_p6 }
  0x31   :  { %p2223_p9 = pnand %p2222_p8, %p2216_p5 }
  0x33   :  { %2226 = shalt.err (!%p2223_p9)
}
  0x34   :  { %53 = dma.hbm_to_vmem [thread:$0]  %s2475_s3, 8192, %s48_s18, [#allocation7], %s2304_s11, %s2304_s11, %s2305_s12  }
  0x35   :  { %s2308_s16 = smov [#allocation9]   ;;  %s2227_s21 = scalar_lea.hbm %s2476_s4, 1024 }
  0x36   :  { %s59_s17 = sshll.u32 %s2308_s16, 4  ;;  %p2228_p10 = scmp.ne.s32.totalorder %s2476_s4, %s2227_s21  ;;  %s60_s17 = int_to_ptr.vmem [resolvable:$true] %s59_s17 }
  0x37   :  { %p2231_p11 = scmp.lt.u32.totalorder %s2227_s21, %s2476_s4 }
  0x39   :  { %p2233_p12 = pnand %p2231_p11, %p2228_p10 }
  0x3b   :  { %2236 = shalt.err (!%p2233_p12)
}
  0x3c   :  { %s2237_s1 = scalar_lea.vmem %s60_s17, 1024  ;;  %p2242_p0 = scmp.lt.s32.totalorder %s60_s17, %s60_s17 }
  0x3d   :  { %p2238_p13 = scmp.ne.s32.totalorder %s60_s17, %s2237_s1  ;;  %p2243_p1 = scmp.lt.s32.totalorder %s2237_s1, %s2237_s1 }
  0x3f   :  { %p2244_p2 = por %p2243_p1, %p2242_p0 }
  0x41   :  { %p2245_p3 = pnand %p2244_p2, %p2238_p13 }
  0x43   :  { %2248 = shalt.err (!%p2245_p3)
}
  0x44   :  { %65 = dma.hbm_to_vmem [thread:$0]  %s2476_s4, 1024, %s60_s17, [#allocation10], %s2304_s11, %s2304_s11, %s2305_s12  }
  0x45   :  { %2293 = dma.done.wait [#allocation4], 512  }
  0x46   :  { %2294 = vsyncadd [#allocation4], 4294966784 }
  0x47   :  { %2295 = dma.done.wait [#allocation7], 16384  }
  0x48   :  { %2296 = vsyncadd [#allocation7], 4294950912 }
  0x49   :  { %2297 = dma.done.wait [#allocation10], 1024  }
  0x4a   :  { %2298 = vsyncadd [#allocation10], 4294966272  ;;  %v2017_v0 = vld [vmem:[#allocation6 + $0x40] sm:$0xff]   ;;  %v2021_v4 = vld [vmem:[#allocation6 + $0x48] sm:$0xff]   ;;  %vm2310_vm0 = vmmov 0  }
  0x4b   :  { %v2018_v1 = vld [vmem:[#allocation6 + $0xc0] sm:$0xff]   ;;  %1802 = vmatprep.subr.bf16.mxu0 %v2017_v0  ;;  %v2022_v5 = vld [vmem:[#allocation6 + $0xc8] sm:$0xff]   ;;  %v2025_v8 = vld [vmem:[#allocation6 + $0x50] sm:$0xff]  }
  0x4c   :  { %v2019_v2 = vld [vmem:[#allocation6] sm:$0xff]   ;;  %1824 = vmatprep.subr.bf16.mxu1 %v2018_v1  ;;  %v2023_v6 = vld [vmem:[#allocation6 + $0x8] sm:$0xff]   ;;  %v2026_v9 = vld [vmem:[#allocation6 + $0xd0] sm:$0xff]  }
  0x4d   :  { %v2020_v3 = vld [vmem:[#allocation6 + $0x80] sm:$0xff]   ;;  %1803 = vmatpush3.bf16.msra.mxu0 %v2019_v2  ;;  %v2024_v7 = vld [vmem:[#allocation6 + $0x88] sm:$0xff]   ;;  %v2027_v10 = vld [vmem:[#allocation6 + $0x10] sm:$0xff]  }
  0x4e   :  { %1825 = vmatpush3.bf16.msra.mxu1 %v2020_v3  ;;  %1804 = vmatprep.subr.bf16.mxu0 %v2021_v4  ;;  %v2028_v11 = vld [vmem:[#allocation6 + $0x90] sm:$0xff]   ;;  %v2029_v12 = vld [vmem:[#allocation6 + $0x58] sm:$0xff]   ;;  %v2033_v16 = vld [vmem:[#allocation6 + $0x60] sm:$0xff]  }
  0x4f   :  { %1826 = vmatprep.subr.bf16.mxu1 %v2022_v5  ;;  %v2030_v13 = vld [vmem:[#allocation6 + $0xd8] sm:$0xff]   ;;  %v2034_v17 = vld [vmem:[#allocation6 + $0xe0] sm:$0xff]   ;;  %v2037_v20 = vld [vmem:[#allocation6 + $0x68] sm:$0xff]  }
  0x50   :  { %v2031_v14 = vld [vmem:[#allocation6 + $0x18] sm:$0xff]   ;;  %v2035_v18 = vld [vmem:[#allocation6 + $0x20] sm:$0xff]   ;;  %v2038_v21 = vld [vmem:[#allocation6 + $0xe8] sm:$0xff]  }
  0x51   :  { %1805 = vmatpush3.bf16.msra.mxu0 %v2023_v6  ;;  %v2032_v15 = vld [vmem:[#allocation6 + $0x98] sm:$0xff]   ;;  %v2036_v19 = vld [vmem:[#allocation6 + $0xa0] sm:$0xff]   ;;  %v2039_v22 = vld [vmem:[#allocation6 + $0x28] sm:$0xff]  }
  0x52   :  { %1827 = vmatpush3.bf16.msra.mxu1 %v2024_v7  ;;  %1806 = vmatprep.subr.bf16.mxu0 %v2025_v8  ;;  %v2040_v23 = vld [vmem:[#allocation6 + $0xa8] sm:$0xff]   ;;  %v2041_v24 = vld [vmem:[#allocation6 + $0x70] sm:$0xff]   ;;  %v2045_v28 = vld [vmem:[#allocation6 + $0x78] sm:$0xff]  }
  0x53   :  { %1828 = vmatprep.subr.bf16.mxu1 %v2026_v9  ;;  %v2042_v25 = vld [vmem:[#allocation6 + $0xf0] sm:$0xff]   ;;  %v2046_v29 = vld [vmem:[#allocation6 + $0xf8] sm:$0xff]   ;;  %v85_v32 = vld [vmem:[#allocation3] sm:$0xff] }
  0x54   :  { %v2043_v26 = vld [vmem:[#allocation6 + $0x30] sm:$0xff]   ;;  %v2047_v30 = vld [vmem:[#allocation6 + $0x38] sm:$0xff]   ;;  %v86_v33 = vld [vmem:[#allocation3 + $0x8] sm:$0xff]  ;;  %v2410_v34 = vcombine.low %v85_v32, %v85_v32  ;;  %v2412_v35 = vcombine.high %v85_v32, %v85_v32 }
  0x55   :  { %1807 = vmatpush3.bf16.msra.mxu0 %v2027_v10  ;;  %v2044_v27 = vld [vmem:[#allocation6 + $0xb0] sm:$0xff]   ;;  %v2048_v31 = vld [vmem:[#allocation6 + $0xb8] sm:$0xff]   ;;  %v2414_v36 = vcombine.low %v86_v33, %v86_v33  ;;  %v2416_v37 = vcombine.high %v86_v33, %v86_v33  ;;  %v2053_v38 = vld [vmem:[#allocation6 + $0x140] sm:$0xff]  }
  0x56   :  { %1829 = vmatpush3.bf16.msra.mxu1 %v2028_v11  ;;  %1808 = vmatprep.subr.bf16.mxu0 %v2029_v12  ;;  %v2054_v39 = vld [vmem:[#allocation6 + $0x1c0] sm:$0xff]   ;;  %v2057_v42 = vld [vmem:[#allocation6 + $0x148] sm:$0xff]   ;;  %v2061_v46 = vld [vmem:[#allocation6 + $0x150] sm:$0xff]  }
  0x57   :  { %1830 = vmatprep.subr.bf16.mxu1 %v2030_v13  ;;  %668 = vmatprep.mubr.bf16.mxu0 %v2412_v35  ;;  %v2055_v40 = vld [vmem:[#allocation6 + $0x100] sm:$0xff]   ;;  %v2058_v43 = vld [vmem:[#allocation6 + $0x1c8] sm:$0xff]   ;;  %v2062_v47 = vld [vmem:[#allocation6 + $0x1d0] sm:$0xff]  }
  0x58   :  { %708 = vmatprep.mubr.bf16.mxu1 %v2416_v37  ;;  %v2056_v41 = vld [vmem:[#allocation6 + $0x180] sm:$0xff]   ;;  %v2059_v44 = vld [vmem:[#allocation6 + $0x108] sm:$0xff]   ;;  %v2063_v48 = vld [vmem:[#allocation6 + $0x110] sm:$0xff]  }
  0x59   :  { %1809 = vmatpush3.bf16.msra.mxu0 %v2031_v14  ;;  %v2060_v45 = vld [vmem:[#allocation6 + $0x188] sm:$0xff]   ;;  %v2064_v49 = vld [vmem:[#allocation6 + $0x190] sm:$0xff]   ;;  %v2065_v50 = vld [vmem:[#allocation6 + $0x158] sm:$0xff]  }
  0x5a   :  { %1831 = vmatpush3.bf16.msra.mxu1 %v2032_v15  ;;  %1810 = vmatprep.subr.bf16.mxu0 %v2033_v16  ;;  %v2066_v51 = vld [vmem:[#allocation6 + $0x1d8] sm:$0xff]   ;;  %v2069_v54 = vld [vmem:[#allocation6 + $0x160] sm:$0xff]   ;;  %v2073_v58 = vld [vmem:[#allocation6 + $0x168] sm:$0xff]   ;;  %v2309_v15 = vmov 0.0  }
  0x5b   :  { %1832 = vmatprep.subr.bf16.mxu1 %v2034_v17  ;;  %v2067_v52 = vld [vmem:[#allocation6 + $0x118] sm:$0xff]   ;;  %v2070_v55 = vld [vmem:[#allocation6 + $0x1e0] sm:$0xff]   ;;  %v2074_v59 = vld [vmem:[#allocation6 + $0x1e8] sm:$0xff]  }
  0x5c   :  { %v2068_v53 = vld [vmem:[#allocation6 + $0x198] sm:$0xff]   ;;  %v2071_v56 = vld [vmem:[#allocation6 + $0x120] sm:$0xff]   ;;  %v2075_v60 = vld [vmem:[#allocation6 + $0x128] sm:$0xff]  }
  0x5d   :  { %1811 = vmatpush3.bf16.msra.mxu0 %v2035_v18  ;;  %v2072_v57 = vld [vmem:[#allocation6 + $0x1a0] sm:$0xff]   ;;  %v2076_v61 = vld [vmem:[#allocation6 + $0x1a8] sm:$0xff]   ;;  %v2077_v62 = vld [vmem:[#allocation6 + $0x170] sm:$0xff]  }
  0x5e   :  { %1833 = vmatpush3.bf16.msra.mxu1 %v2036_v19  ;;  %1812 = vmatprep.subr.bf16.mxu0 %v2037_v20  ;;  %v2078_v63 = vld [vmem:[#allocation6 + $0x1f0] sm:$0xff]   ;;  %v2081_v2 = vld [vmem:[#allocation6 + $0x178] sm:$0xff]   ;;  %v2089_v12 = vld [vmem:[#allocation8 + $0x40] sm:$0xff]  }
  0x5f   :  { %1834 = vmatprep.subr.bf16.mxu1 %v2038_v21  ;;  %v2079_v0 = vld [vmem:[#allocation6 + $0x130] sm:$0xff]   ;;  %v2082_v3 = vld [vmem:[#allocation6 + $0x1f8] sm:$0xff]   ;;  %v2090_v13 = vld [vmem:[#allocation8] sm:$0xff]  }
  0x60   :  { %v2080_v1 = vld [vmem:[#allocation6 + $0x1b0] sm:$0xff]   ;;  %v2083_v4 = vld [vmem:[#allocation6 + $0x138] sm:$0xff]   ;;  %v2091_v14 = vld [vmem:[#allocation9] sm:$0xff]  }
  0x61   :  { %1813 = vmatpush3.bf16.msra.mxu0 %v2039_v22  ;;  %v2084_v5 = vld [vmem:[#allocation6 + $0x1b8] sm:$0xff]   ;;  %v87_v6 = vld [vmem:[#allocation3 + $0x10] sm:$0xff]  ;;  %v2092_v16 = vld [vmem:[#allocation8 + $0x48] sm:$0xff]  }
  0x62   :  { %1835 = vmatpush3.bf16.msra.mxu1 %v2040_v23  ;;  %1814 = vmatprep.subr.bf16.mxu0 %v2041_v24  ;;  %v2422_v7 = vcombine.low %v87_v6, %v87_v6  ;;  %v2424_v8 = vcombine.high %v87_v6, %v87_v6  ;;  %v88_v9 = vld [vmem:[#allocation3 + $0x18] sm:$0xff]  ;;  %v2094_v17 = vld [vmem:[#allocation9 + $0x8] sm:$0xff]   ;;  %v2095_v19 = vld [vmem:[#allocation8 + $0x50] sm:$0xff]  }
  0x63   :  { %1836 = vmatprep.subr.bf16.mxu1 %v2042_v25  ;;  %v2426_v10 = vcombine.low %v88_v9, %v88_v9  ;;  %v2428_v11 = vcombine.high %v88_v9, %v88_v9  ;;  %v2093_v18 = vld [vmem:[#allocation8 + $0x8] sm:$0xff]   ;;  %v2097_v20 = vld [vmem:[#allocation9 + $0x10] sm:$0xff]   ;;  %v2098_v22 = vld [vmem:[#allocation8 + $0x58] sm:$0xff]  }
  0x64   :  { %v2096_v21 = vld [vmem:[#allocation8 + $0x10] sm:$0xff]   ;;  %v2100_v23 = vld [vmem:[#allocation9 + $0x18] sm:$0xff]   ;;  %v2101_v25 = vld [vmem:[#allocation8 + $0x60] sm:$0xff]  }
  0x65   :  { %1815 = vmatpush3.bf16.msra.mxu0 %v2043_v26  ;;  %v2099_v24 = vld [vmem:[#allocation8 + $0x18] sm:$0xff]   ;;  %v2102_v26 = vld [vmem:[#allocation8 + $0x20] sm:$0xff]   ;;  %v2108_v32 = vld [vmem:[#allocation8 + $0x30] sm:$0xff]  }
  0x66   :  { %1837 = vmatpush3.bf16.msra.mxu1 %v2044_v27  ;;  %1816 = vmatprep.subr.bf16.mxu0 %v2045_v28  ;;  %v2103_v27 = vld [vmem:[#allocation9 + $0x20] sm:$0xff]   ;;  %v2104_v28 = vld [vmem:[#allocation8 + $0x68] sm:$0xff]   ;;  %v2109_v33 = vld [vmem:[#allocation9 + $0x30] sm:$0xff]  }
  0x67   :  { %1838 = vmatprep.subr.bf16.mxu1 %v2046_v29  ;;  %v2105_v29 = vld [vmem:[#allocation8 + $0x28] sm:$0xff]  }
  0x69   :  { %1817 = vmatpush3.bf16.msra.mxu0 %v2047_v30  ;;  %v2106_v30 = vld [vmem:[#allocation9 + $0x28] sm:$0xff]  }
  0x6a   :  { %1839 = vmatpush3.bf16.msra.mxu1 %v2048_v31  ;;  %1846 = vmatprep.subr.bf16.mxu0 %v2053_v38  ;;  %v2107_v31 = vld [vmem:[#allocation8 + $0x70] sm:$0xff]   ;;  %v2111_v38 = vld [vmem:[#allocation8 + $0x38] sm:$0xff]  }
  0x6b   :  { %1868 = vmatprep.subr.bf16.mxu1 %v2054_v39  ;;  %v2112_v39 = vld [vmem:[#allocation9 + $0x38] sm:$0xff]  }
  0x6c   :  { %669 = vmatmul.mubr.bf16.vlgmr.msra.gmra.mrb[0].mxu0 %v2410_v34 }
  0x6d   :  { %709 = vmatmul.mubr.bf16.vlgmr.msra.gmra.mrb[0].mxu1 %v2414_v36  ;;  %1847 = vmatpush3.bf16.msra.mxu0 %v2055_v40  ;;  %v2113_v40 = vld [vmem:[#allocation8 + $0xc0] sm:$0xff]  }
  0x6e   :  { %1869 = vmatpush3.bf16.msra.mxu1 %v2056_v41  ;;  %1848 = vmatprep.subr.bf16.mxu0 %v2057_v42  ;;  %v2115_v41 = vld [vmem:[#allocation8 + $0x140] sm:$0xff]  }
  0x6f   :  { %1870 = vmatprep.subr.bf16.mxu1 %v2058_v43  ;;  %748 = vmatprep.mubr.bf16.mxu0 %v2424_v8  ;;  %v2116_v42 = vld [vmem:[#allocation8 + $0x100] sm:$0xff]   ;;  %v2119_v43 = vld [vmem:[#allocation8 + $0x148] sm:$0xff]  }
  0x70   :  { %788 = vmatprep.mubr.bf16.mxu1 %v2428_v11 }
  0x71   :  { %1849 = vmatpush3.bf16.msra.mxu0 %v2059_v44  ;;  %v2120_v44 = vld [vmem:[#allocation8 + $0x108] sm:$0xff]  }
  0x72   :  { %1871 = vmatpush3.bf16.msra.mxu1 %v2060_v45  ;;  %1850 = vmatprep.subr.bf16.mxu0 %v2061_v46  ;;  %v2123_v45 = vld [vmem:[#allocation8 + $0x150] sm:$0xff]  }
  0x73   :  { %1872 = vmatprep.subr.bf16.mxu1 %v2062_v47  ;;  %v2124_v46 = vld [vmem:[#allocation8 + $0x110] sm:$0xff]   ;;  %v2127_v47 = vld [vmem:[#allocation8 + $0x158] sm:$0xff]  }
  0x75   :  { %1851 = vmatpush3.bf16.msra.mxu0 %v2063_v48  ;;  %v2128_v48 = vld [vmem:[#allocation8 + $0x118] sm:$0xff]  }
  0x76   :  { %1873 = vmatpush3.bf16.msra.mxu1 %v2064_v49  ;;  %1852 = vmatprep.subr.bf16.mxu0 %v2065_v50  ;;  %v2132_v49 = vld [vmem:[#allocation8 + $0x120] sm:$0xff]   ;;  %v2135_v50 = vld [vmem:[#allocation8 + $0x168] sm:$0xff]  }
  0x77   :  { %1874 = vmatprep.subr.bf16.mxu1 %v2066_v51  ;;  %v2136_v51 = vld [vmem:[#allocation8 + $0x128] sm:$0xff]  }
  0x79   :  { %1853 = vmatpush3.bf16.msra.mxu0 %v2067_v52  ;;  %v2139_v52 = vld [vmem:[#allocation8 + $0x170] sm:$0xff]  }
  0x7a   :  { %1875 = vmatpush3.bf16.msra.mxu1 %v2068_v53  ;;  %1854 = vmatprep.subr.bf16.mxu0 %v2069_v54  ;;  %v2140_v53 = vld [vmem:[#allocation8 + $0x130] sm:$0xff]   ;;  %v2143_v54 = vld [vmem:[#allocation8 + $0x178] sm:$0xff]  }
  0x7b   :  { %1876 = vmatprep.subr.bf16.mxu1 %v2070_v55  ;;  %v2144_v55 = vld [vmem:[#allocation8 + $0x138] sm:$0xff]  }
  0x7d   :  { %1855 = vmatpush3.bf16.msra.mxu0 %v2071_v56 }
  0x7e   :  { %1877 = vmatpush3.bf16.msra.mxu1 %v2072_v57  ;;  %1856 = vmatprep.subr.bf16.mxu0 %v2073_v58  ;;  %v1648_v58 = vld [vmem:[%s2474_s2] ss:$0 sm:$0xff]  ;;  %s2311_s2 = smov [#allocation11]  }
  0x7f   :  { %1878 = vmatprep.subr.bf16.mxu1 %v2074_v59  ;;  %s1623_s12 = sshll.u32 %s2311_s2, 4  ;;  %s1624_s12 = int_to_ptr.vmem [resolvable:$true] %s1623_s12 }
  0x80   :  { %s2249_s25 = scalar_lea.vmem %s1624_s12, 128  ;;  %p2254_p5 = scmp.lt.s32.totalorder %s1624_s12, %s1624_s12 }
  0x81   :  { %1857 = vmatpush3.bf16.msra.mxu0 %v2075_v60  ;;  %p2250_p4 = scmp.ne.s32.totalorder %s1624_s12, %s2249_s25  ;;  %p2255_p6 = scmp.lt.s32.totalorder %s2249_s25, %s2249_s25 }
  0x82   :  { %1879 = vmatpush3.bf16.msra.mxu1 %v2076_v61  ;;  %1858 = vmatprep.subr.bf16.mxu0 %v2077_v62 }
  0x83   :  { %1880 = vmatprep.subr.bf16.mxu1 %v2078_v63  ;;  %p2256_p7 = por %p2255_p6, %p2254_p5 }
  0x85   :  { %1859 = vmatpush3.bf16.msra.mxu0 %v2079_v0  ;;  %p2257_p8 = pnand %p2256_p7, %p2250_p4 }
  0x86   :  { %1881 = vmatpush3.bf16.msra.mxu1 %v2080_v1  ;;  %1860 = vmatprep.subr.bf16.mxu0 %v2081_v2 }
  0x87   :  { %1882 = vmatprep.subr.bf16.mxu1 %v2082_v3 }
  0x89   :  { %1861 = vmatpush3.bf16.msra.mxu0 %v2083_v4 }
  0x8a   :  { %1883 = vmatpush3.bf16.msra.mxu1 %v2084_v5  ;;  %1987 = vmatprep.subr.bf16.mxu0 %v2309_v15 }
  0x8b   :  { %1899 = vmatprep.subr.bf16.mxu1 %v2089_v12 }
  0x8c   :  { %749 = vmatmul.mubr.bf16.vlgmr.msra.gmra.mrb[4].mxu0 %v2422_v7 }
  0x8d   :  { %789 = vmatmul.mubr.bf16.vlgmr.msra.gmra.mrb[4].mxu1 %v2426_v10  ;;  %1988 = vmatpush3.bf16.msra.mxu0 %v2091_v14 }
  0x8e   :  { %1480 = vmatprep.mubr.bf16.mxu1 %v2412_v35  ;;  %1900 = vmatpush3.bf16.msra.mxu1 %v2090_v13  ;;  %v2110_v35 = vld [vmem:[#allocation8 + $0x78] sm:$0xff]  }
  0x8f   :  { %1989 = vmatprep.subr.bf16.mxu0 %v2309_v15  ;;  %1901 = vmatprep.subr.bf16.mxu1 %v2092_v16 }
  0x90   :  { %2003 = vmatprep.mubr.msk.bf16.mxu0 %vm2310_vm0, %v2309_v15 }
  0x91   :  { %1990 = vmatpush3.bf16.msra.mxu0 %v2094_v17 }
  0x92   :  { %1902 = vmatpush3.bf16.msra.mxu1 %v2093_v18  ;;  %1991 = vmatprep.subr.bf16.mxu0 %v2309_v15 }
  0x93   :  { %1903 = vmatprep.subr.bf16.mxu1 %v2095_v19 }
  0x95   :  { %1992 = vmatpush3.bf16.msra.mxu0 %v2097_v20  ;;  %v2114_v20 = vld [vmem:[#allocation8 + $0x80] sm:$0xff]  }
  0x96   :  { %1904 = vmatpush3.bf16.msra.mxu1 %v2096_v21  ;;  %1993 = vmatprep.subr.bf16.mxu0 %v2309_v15  ;;  %v2117_v21 = vld [vmem:[#allocation8 + $0xc8] sm:$0xff]  }
  0x97   :  { %1905 = vmatprep.subr.bf16.mxu1 %v2098_v22 }
  0x99   :  { %1994 = vmatpush3.bf16.msra.mxu0 %v2100_v23  ;;  %v2118_v23 = vld [vmem:[#allocation8 + $0x88] sm:$0xff]  }
  0x9a   :  { %1906 = vmatpush3.bf16.msra.mxu1 %v2099_v24  ;;  %1995 = vmatprep.subr.bf16.mxu0 %v2309_v15  ;;  %v2121_v24 = vld [vmem:[#allocation8 + $0xd0] sm:$0xff]  }
  0x9b   :  { %1907 = vmatprep.subr.bf16.mxu1 %v2101_v25  ;;  %v2122_v25 = vld [vmem:[#allocation8 + $0x90] sm:$0xff]  }
  0x9d   :  { %1996 = vmatpush3.bf16.msra.mxu0 %v2103_v27  ;;  %v2126_v27 = vld [vmem:[#allocation8 + $0x98] sm:$0xff]  }
  0x9e   :  { %1908 = vmatpush3.bf16.msra.mxu1 %v2102_v26  ;;  %1997 = vmatprep.subr.bf16.mxu0 %v2309_v15  ;;  %v2125_v26 = vld [vmem:[#allocation8 + $0xd8] sm:$0xff]  }
  0x9f   :  { %1909 = vmatprep.subr.bf16.mxu1 %v2104_v28  ;;  %v2129_v28 = vld [vmem:[#allocation8 + $0xe0] sm:$0xff]  }
  0xa1   :  { %1998 = vmatpush3.bf16.msra.mxu0 %v2106_v30  ;;  %v2133_v30 = vld [vmem:[#allocation8 + $0xe8] sm:$0xff]  }
  0xa2   :  { %1910 = vmatpush3.bf16.msra.mxu1 %v2105_v29  ;;  %1999 = vmatprep.subr.bf16.mxu0 %v2309_v15  ;;  %v2130_v29 = vld [vmem:[#allocation8 + $0xa0] sm:$0xff]  }
  0xa3   :  { %1911 = vmatprep.subr.bf16.mxu1 %v2107_v31  ;;  %v2134_v31 = vld [vmem:[#allocation8 + $0xa8] sm:$0xff]  }
  0xa5   :  { %2000 = vmatpush3.bf16.msra.mxu0 %v2109_v33  ;;  %v2141_v33 = vld [vmem:[#allocation8 + $0xf8] sm:$0xff]  }
  0xa6   :  { %1912 = vmatpush3.bf16.msra.mxu1 %v2108_v32  ;;  %2001 = vmatprep.subr.bf16.mxu0 %v2309_v15  ;;  %v2137_v32 = vld [vmem:[#allocation8 + $0xf0] sm:$0xff]  }
  0xa7   :  { %1913 = vmatprep.subr.bf16.mxu1 %v2110_v35  ;;  %v2142_v35 = vld [vmem:[#allocation8 + $0xb8] sm:$0xff]  }
  0xa9   :  { %2002 = vmatpush3.bf16.msra.mxu0 %v2112_v39  ;;  %v2146_v39 = vld [vmem:[#allocation8 + $0x180] sm:$0xff]  }
  0xaa   :  { %1914 = vmatpush3.bf16.msra.mxu1 %v2111_v38  ;;  %1921 = vmatprep.subr.bf16.mxu0 %v2113_v40  ;;  %v2145_v38 = vld [vmem:[#allocation8 + $0x1c0] sm:$0xff]   ;;  %v2147_v40 = vld [vmem:[#allocation8 + $0x1c8] sm:$0xff]  }
  0xab   :  { %1943 = vmatprep.subr.bf16.mxu1 %v2115_v41  ;;  %v2148_v41 = vld [vmem:[#allocation8 + $0x188] sm:$0xff]  }
  0xad   :  { %1481 = vmatmul.mubr.bf16.vlgmr.msra.gmra.mrb[8].mxu1 %v2410_v34  ;;  %v2131_v34 = vld [vmem:[#allocation8 + $0x160] sm:$0xff]  }
  0xae   :  { %1560 = vmatprep.mubr.bf16.mxu1 %v2424_v8  ;;  %1944 = vmatpush3.bf16.msra.mxu1 %v2116_v42  ;;  %v2149_v42 = vld [vmem:[#allocation8 + $0x1d0] sm:$0xff]  }
  0xaf   :  { %1945 = vmatprep.subr.bf16.mxu1 %v2119_v43  ;;  %v2150_v43 = vld [vmem:[#allocation8 + $0x190] sm:$0xff]  }
  0xb2   :  { %1946 = vmatpush3.bf16.msra.mxu1 %v2120_v44  ;;  %v2151_v44 = vld [vmem:[#allocation8 + $0x1d8] sm:$0xff]  }
  0xb3   :  { %1947 = vmatprep.subr.bf16.mxu1 %v2123_v45  ;;  %v2152_v45 = vld [vmem:[#allocation8 + $0x198] sm:$0xff]  }
  0xb6   :  { %1948 = vmatpush3.bf16.msra.mxu1 %v2124_v46  ;;  %v2153_v46 = vld [vmem:[#allocation8 + $0x1e0] sm:$0xff]  }
  0xb7   :  { %1949 = vmatprep.subr.bf16.mxu1 %v2127_v47  ;;  %v2154_v47 = vld [vmem:[#allocation8 + $0x1a0] sm:$0xff]  }
  0xba   :  { %1950 = vmatpush3.bf16.msra.mxu1 %v2128_v48  ;;  %v2155_v48 = vld [vmem:[#allocation8 + $0x1e8] sm:$0xff]  }
  0xbb   :  { %1951 = vmatprep.subr.bf16.mxu1 %v2131_v34  ;;  %v2157_v34 = vld [vmem:[#allocation8 + $0x1f0] sm:$0xff]  }
  0xbe   :  { %1952 = vmatpush3.bf16.msra.mxu1 %v2132_v49  ;;  %v2159_v49 = vld [vmem:[#allocation8 + $0x1f8] sm:$0xff]  }
  0xbf   :  { %1953 = vmatprep.subr.bf16.mxu1 %v2135_v50  ;;  %v2160_v50 = vld [vmem:[#allocation8 + $0x1b8] sm:$0xff]  }
  0xc2   :  { %1954 = vmatpush3.bf16.msra.mxu1 %v2136_v51 }
  0xc3   :  { %1955 = vmatprep.subr.bf16.mxu1 %v2139_v52 }
  0xc6   :  { %1956 = vmatpush3.bf16.msra.mxu1 %v2140_v53 }
  0xc7   :  { %1957 = vmatprep.subr.bf16.mxu1 %v2143_v54 }
  0xca   :  { %1958 = vmatpush3.bf16.msra.mxu1 %v2144_v55 }
  0xcd   :  { %1561 = vmatmul.mubr.bf16.vlgmr.msra.gmra.mrb[12].mxu1 %v2422_v7 }
 0x13f   :  { %v1818_v56 = vpop.f32.mrb[0].mxu0 }
 0x140   :  { %v1840_v57 = vpop.f32.mrb[0].mxu1  ;;  %v1819_v59 = vpop.f32.mrb[1].mxu0 }
 0x141   :  { %v1841_v60 = vpop.f32.mrb[1].mxu1  ;;  %v1820_v61 = vadd.f32 %v1819_v59, %v1818_v56  ;;  %v1821_v63 = vpop.f32.mrb[2].mxu0 }
 0x142   :  { %v1842_v62 = vadd.f32 %v1841_v60, %v1840_v57  ;;  %v1843_v0 = vpop.f32.mrb[2].mxu1  ;;  %v1822_v1 = vpop.f32.mrb[3].mxu0 }
 0x143   :  { %v1844_v2 = vpop.f32.mrb[3].mxu1  ;;  %v671_v3 = vadd.f32 %v1820_v61, %v1648_v58 }
 0x145   :  { %v711_v4 = vadd.f32 %v1842_v62, %v671_v3 }
 0x15f   :  { %v1862_v5 = vpop.f32.mrb[4].mxu0 }
 0x160   :  { %v1884_v6 = vpop.f32.mrb[4].mxu1  ;;  %v1863_v8 = vpop.f32.mrb[5].mxu0 }
 0x161   :  { %v1885_v7 = vpop.f32.mrb[5].mxu1  ;;  %v1864_v9 = vadd.f32 %v1863_v8, %v1862_v5  ;;  %v1865_v13 = vpop.f32.mrb[6].mxu0 }
 0x162   :  { %v1886_v12 = vadd.f32 %v1885_v7, %v1884_v6  ;;  %v1887_v14 = vpop.f32.mrb[6].mxu1  ;;  %v1866_v15 = vpop.f32.mrb[7].mxu0 }
 0x163   :  { %v1888_v16 = vpop.f32.mrb[7].mxu1  ;;  %v751_v17 = vadd.f32 %v1864_v9, %v711_v4 }
 0x165   :  { %v791_v18 = vadd.f32 %v1886_v12, %v751_v17 }
 0x167   :  { %v797_v19 = vpack.c.bf16 %v791_v18, %v791_v18  ;;  %796 = vst [vmem:[#allocation11] sm:$0xff] %v791_v18 }
 0x169   :  { %798 = vst [vmem:[#allocation2] sm:$0xf] %v797_v19 }
 0x170   :  { %v931_v22 = vld [vmem:[#allocation2] sm:$0xf] }
 0x171   :  { %2004 = vmatmul.mubr.bf16.vlgmr.msra.gmra.mrb[8].mxu0 %v931_v22 }
 0x172   :  { %1922 = vmatpush3.bf16.msra.mxu0 %v2114_v20  ;;  %1520 = vmatprep.mubr.bf16.mxu0 %v2416_v37  ;;  %v2138_v37 = vld [vmem:[#allocation8 + $0xb0] sm:$0xff]  }
 0x173   :  { %1923 = vmatprep.subr.bf16.mxu0 %v2117_v21 }
 0x176   :  { %1924 = vmatpush3.bf16.msra.mxu0 %v2118_v23 }
 0x177   :  { %1925 = vmatprep.subr.bf16.mxu0 %v2121_v24 }
 0x17a   :  { %1926 = vmatpush3.bf16.msra.mxu0 %v2122_v25 }
 0x17b   :  { %1927 = vmatprep.subr.bf16.mxu0 %v2125_v26 }
 0x17e   :  { %1928 = vmatpush3.bf16.msra.mxu0 %v2126_v27 }
 0x17f   :  { %1929 = vmatprep.subr.bf16.mxu0 %v2129_v28 }
 0x180   :  { %v1915_v51 = vpop.f32.mrb[8].mxu1 }
 0x181   :  { %v1916_v52 = vpop.f32.mrb[9].mxu1 }
 0x182   :  { %1930 = vmatpush3.bf16.msra.mxu0 %v2130_v29  ;;  %v1917_v53 = vadd.f32 %v1916_v52, %v1915_v51  ;;  %v1918_v54 = vpop.f32.mrb[10].mxu1 }
 0x183   :  { %1931 = vmatprep.subr.bf16.mxu0 %v2133_v30  ;;  %v1919_v55 = vpop.f32.mrb[11].mxu1 }
 0x186   :  { %1932 = vmatpush3.bf16.msra.mxu0 %v2134_v31 }
 0x187   :  { %1933 = vmatprep.subr.bf16.mxu0 %v2137_v32 }
 0x18a   :  { %1934 = vmatpush3.bf16.msra.mxu0 %v2138_v37 }
 0x18b   :  { %1935 = vmatprep.subr.bf16.mxu0 %v2141_v33 }
 0x18e   :  { %1936 = vmatpush3.bf16.msra.mxu0 %v2142_v35 }
 0x18f   :  { %1965 = vmatprep.subr.bf16.mxu0 %v2145_v38 }
 0x191   :  { %1521 = vmatmul.mubr.bf16.vlgmr.msra.gmra.mrb[12].mxu0 %v2414_v36  ;;  %v2156_v36 = vld [vmem:[#allocation8 + $0x1a8] sm:$0xff]  }
 0x192   :  { %1966 = vmatpush3.bf16.msra.mxu0 %v2146_v39  ;;  %1600 = vmatprep.mubr.bf16.mxu0 %v2428_v11  ;;  %v2158_v11 = vld [vmem:[#allocation8 + $0x1b0] sm:$0xff]  }
 0x193   :  { %1967 = vmatprep.subr.bf16.mxu0 %v2147_v40 }
 0x196   :  { %1968 = vmatpush3.bf16.msra.mxu0 %v2148_v41 }
 0x197   :  { %1969 = vmatprep.subr.bf16.mxu0 %v2149_v42 }
 0x19a   :  { %1970 = vmatpush3.bf16.msra.mxu0 %v2150_v43 }
 0x19b   :  { %1971 = vmatprep.subr.bf16.mxu0 %v2151_v44 }
 0x19e   :  { %1972 = vmatpush3.bf16.msra.mxu0 %v2152_v45 }
 0x19f   :  { %1973 = vmatprep.subr.bf16.mxu0 %v2153_v46 }
 0x1a0   :  { %v1959_v56 = vpop.f32.mrb[12].mxu1 }
 0x1a1   :  { %v1960_v57 = vpop.f32.mrb[13].mxu1 }
 0x1a2   :  { %1974 = vmatpush3.bf16.msra.mxu0 %v2154_v47  ;;  %v1961_v58 = vadd.f32 %v1960_v57, %v1959_v56  ;;  %v1962_v59 = vpop.f32.mrb[14].mxu1 }
 0x1a3   :  { %1975 = vmatprep.subr.bf16.mxu0 %v2155_v48  ;;  %v1963_v60 = vpop.f32.mrb[15].mxu1 }
 0x1a6   :  { %1976 = vmatpush3.bf16.msra.mxu0 %v2156_v36 }
 0x1a7   :  { %1977 = vmatprep.subr.bf16.mxu0 %v2157_v34 }
 0x1aa   :  { %1978 = vmatpush3.bf16.msra.mxu0 %v2158_v11 }
 0x1ab   :  { %1979 = vmatprep.subr.bf16.mxu0 %v2159_v49 }
 0x1ae   :  { %1980 = vmatpush3.bf16.msra.mxu0 %v2160_v50 }
 0x1b1   :  { %1601 = vmatmul.mubr.bf16.vlgmr.msra.gmra.mrb[16].mxu0 %v2426_v10 }
 0x1b2   :  { %2260 = shalt.err (!%p2257_p8)
}
 0x1b3   :  { %s2261_s29 = scalar_lea.hbm %s2478_s6, 128 }
 0x1b4   :  { %p2262_p9 = scmp.ne.s32.totalorder %s2478_s6, %s2261_s29  ;;  %p2265_p10 = scmp.lt.u32.totalorder %s2261_s29, %s2478_s6 }
 0x1b6   :  { %p2267_p11 = pnand %p2265_p10, %p2262_p9 }
 0x1b8   :  { %2270 = shalt.err (!%p2267_p11)
}
 0x1b9   :  { %1626 = dma.vmem_to_hbm [thread:$0]  %s1624_s12, 128, %s2478_s6, [#allocation5]   ;;  %v1801_v15 = vld [vmem:[%s2477_s5] ss:$0 sm:$0xff] }
 0x1ba   :  { %s2312_s6 = smov [#allocation12]  }
 0x1bb   :  { %s1633_s16 = sshll.u32 %s2312_s6, 4  ;;  %s1634_s16 = int_to_ptr.vmem [resolvable:$true] %s1633_s16 }
 0x1bc   :  { %s2271_s17 = scalar_lea.vmem %s1634_s16, 128  ;;  %p2276_p13 = scmp.lt.s32.totalorder %s1634_s16, %s1634_s16 }
 0x1bd   :  { %p2272_p12 = scmp.ne.s32.totalorder %s1634_s16, %s2271_s17  ;;  %p2277_p0 = scmp.lt.s32.totalorder %s2271_s17, %s2271_s17 }
 0x1bf   :  { %p2278_p1 = por %p2277_p0, %p2276_p13 }
 0x1c1   :  { %p2279_p2 = pnand %p2278_p1, %p2272_p12 }
 0x244   :  { %v1030_v10 = vpop.f32.mrb[8].mxu0 }
 0x245   :  { %v1483_v61 = vadd.f32 %v1917_v53, %v1030_v10  ;;  %v2005_v62 = vpop.f32.mrb[9].mxu0 }
 0x246   :  { %v1033_v63 = vpop.f32.mrb[10].mxu0 }
 0x247   :  { %v2006_v0 = vpop.f32.mrb[11].mxu0 }
 0x264   :  { %v1937_v1 = vpop.f32.mrb[12].mxu0 }
 0x265   :  { %v1938_v2 = vpop.f32.mrb[13].mxu0 }
 0x266   :  { %v1939_v3 = vadd.f32 %v1938_v2, %v1937_v1  ;;  %v1940_v4 = vpop.f32.mrb[14].mxu0 }
 0x267   :  { %v1941_v5 = vpop.f32.mrb[15].mxu0 }
 0x268   :  { %v1523_v6 = vadd.f32 %v1939_v3, %v1483_v61 }
 0x26a   :  { %v1563_v8 = vadd.f32 %v1961_v58, %v1523_v6 }
 0x284   :  { %v1981_v7 = vpop.f32.mrb[16].mxu0 }
 0x285   :  { %v1982_v9 = vpop.f32.mrb[17].mxu0 }
 0x286   :  { %v1983_v12 = vadd.f32 %v1982_v9, %v1981_v7  ;;  %v1984_v13 = vpop.f32.mrb[18].mxu0 }
 0x287   :  { %v1985_v14 = vpop.f32.mrb[19].mxu0 }
 0x288   :  { %v1603_v16 = vadd.f32 %v1983_v12, %v1563_v8 }
 0x28a   :  { %v1615_v17 = vadd.f32 %v1801_v15, %v1603_v16 }
 0x28c   :  { %1616 = vst [vmem:[#allocation12] sm:$0xff] %v1615_v17 }
 0x28d   :  { %2282 = shalt.err (!%p2279_p2)
}
 0x28e   :  { %s2283_s21 = scalar_lea.hbm %s2479_s7, 128 }
 0x28f   :  { %p2284_p3 = scmp.ne.s32.totalorder %s2479_s7, %s2283_s21  ;;  %p2287_p4 = scmp.lt.u32.totalorder %s2283_s21, %s2479_s7 }
 0x291   :  { %p2289_p5 = pnand %p2287_p4, %p2284_p3 }
 0x293   :  { %2292 = shalt.err (!%p2289_p5)
}
 0x294   :  { %1636 = dma.vmem_to_hbm [thread:$0]  %s1634_s16, 128, %s2479_s7, [#allocation13]  }
 0x295   :  { %2299 = dma.done.wait [#allocation5], 128  }
 0x296   :  { %2300 = vsyncadd [#allocation5], 4294967168 }
 0x297   :  { %2301 = dma.done.wait [#allocation13], 128  }
 0x298   :  { %2302 = vsyncadd [#allocation13], 4294967168 }
 0x299   :  { %1643 = vsyncpa [#allocation4], 1 }
 0x29a   :  { %1644 = vsyncpa [#allocation7], 1 }
 0x29b   :  { %1645 = vsyncpa [#allocation10], 1 }
 0x29c   :  { %1646 = vsyncpa [#allocation5], 1 }
 0x29d   :  { %1647 = vsyncpa [#allocation13], 1 }

// kernel: tpu_custom_call.1
= control target key start
LH: loop header
LB: loop body
LE: loop exit
PB: predicated region body
PF: predicated region fallthrough
CT: control target
= control target key end

     0   :  { %13 = vsyncpa [#allocation4], 0  ;;  %s2472_s0 = inlined_call_operand.hbm [shape: bf16[8,1024], index: 0, kind: input, shape index: {}]   ;;  %s2473_s1 = inlined_call_operand.hbm [shape: bf16[1024,128], index: 1, kind: input, shape index: {}]   ;;  %s2474_s2 = inlined_call_operand.vmem [shape: f32[1,128], index: 2, kind: input, shape index: {}]   ;;  %s2475_s3 = inlined_call_operand.hbm [shape: bf16[1024,128], index: 3, kind: input, shape index: {}]   ;;  %s2476_s4 = inlined_call_operand.hbm [shape: bf16[128,128], index: 4, kind: input, shape index: {}]   ;;  %s2477_s5 = inlined_call_operand.vmem [shape: f32[1,128], index: 5, kind: input, shape index: {}]   ;;  %s2478_s6 = inlined_call_operand.hbm [shape: f32[8,128], index: 6, kind: output, shape index: {0}]   ;;  %s2479_s7 = inlined_call_operand.hbm [shape: f32[8,128], index: 7, kind: output, shape index: {1}]  }
   0x1   :  { %14 = vsyncpa [#allocation7], 0 }
   0x2   :  { %15 = vsyncpa [#allocation10], 0 }
   0x3   :  { %16 = vsyncpa [#allocation5], 0 }
   0x4   :  { %17 = vsyncpa [#allocation13], 0  ;;  %s2303_s24 = smov [#allocation6]   ;;  %s2161_s28 = scalar_lea.hbm %s2473_s1, 8192 }
   0x5   :  { %s33_s25 = sshll.u32 %s2303_s24, 4  ;;  %p2162_p0 = scmp.ne.s32.totalorder %s2473_s1, %s2161_s28  ;;  %s34_s25 = int_to_ptr.vmem [resolvable:$true] %s33_s25 }
   0x6   :  { %p2165_p1 = scmp.lt.u32.totalorder %s2161_s28, %s2473_s1 }
   0x8   :  { %p2167_p2 = pnand %p2165_p1, %p2162_p0 }
   0xa   :  { %2170 = shalt.err (!%p2167_p2)
}
   0xb   :  { %s2171_s10 = scalar_lea.vmem %s34_s25, 8192  ;;  %p2176_p4 = scmp.lt.s32.totalorder %s34_s25, %s34_s25 }
   0xc   :  { %p2172_p3 = scmp.ne.s32.totalorder %s34_s25, %s2171_s10  ;;  %p2177_p5 = scmp.lt.s32.totalorder %s2171_s10, %s2171_s10 }
   0xe   :  { %p2178_p6 = por %p2177_p5, %p2176_p4 }
  0x10   :  { %p2179_p7 = pnand %p2178_p6, %p2172_p3 }
  0x12   :  { %2182 = shalt.err (!%p2179_p7)
}
  0x13   :  { %s2304_s11 = smov 64   ;;  %s2305_s12 = smov 4  }
  0x14   :  { %39 = dma.hbm_to_vmem [thread:$0]  %s2473_s1, 8192, %s34_s25, [#allocation7], %s2304_s11, %s2304_s11, %s2305_s12  }
  0x15   :  { %s2306_s15 = smov [#allocation3]   ;;  %s2307_s17 = smov [#allocation8]  }
  0x16   :  { %s24_s16 = sshll.u32 %s2306_s15, 4  ;;  %s47_s18 = sshll.u32 %s2307_s17, 4  ;;  %s25_s16 = int_to_ptr.vmem [resolvable:$true] %s24_s16  ;;  %s48_s18 = int_to_ptr.vmem [resolvable:$true] %s47_s18 }
  0x17   :  { %s2183_s21 = scalar_lea.hbm %s2472_s0, 512 }
  0x18   :  { %p2184_p8 = scmp.ne.s32.totalorder %s2472_s0, %s2183_s21  ;;  %p2187_p9 = scmp.lt.u32.totalorder %s2183_s21, %s2472_s0 }
  0x1a   :  { %p2189_p10 = pnand %p2187_p9, %p2184_p8 }
  0x1c   :  { %2192 = shalt.err (!%p2189_p10)
}
  0x1d   :  { %s2193_s1 = scalar_lea.vmem %s25_s16, 512  ;;  %p2198_p12 = scmp.lt.s32.totalorder %s25_s16, %s25_s16 }
  0x1e   :  { %p2194_p11 = scmp.ne.s32.totalorder %s25_s16, %s2193_s1  ;;  %p2199_p13 = scmp.lt.s32.totalorder %s2193_s1, %s2193_s1 }
  0x20   :  { %p2200_p0 = por %p2199_p13, %p2198_p12 }
  0x22   :  { %p2201_p1 = pnand %p2200_p0, %p2194_p11 }
  0x24   :  { %2204 = shalt.err (!%p2201_p1)
}
  0x25   :  { %27 = dma.hbm_to_vmem [thread:$0]  %s2472_s0, 512, %s25_s16, [#allocation4]  }
  0x26   :  { %s2205_s30 = scalar_lea.hbm %s2475_s3, 8192 }
  0x27   :  { %p2206_p2 = scmp.ne.s32.totalorder %s2475_s3, %s2205_s30  ;;  %p2209_p3 = scmp.lt.u32.totalorder %s2205_s30, %s2475_s3 }
  0x29   :  { %p2211_p4 = pnand %p2209_p3, %p2206_p2 }
  0x2b   :  { %2214 = shalt.err (!%p2211_p4)
}
  0x2c   :  { %s2215_s14 = scalar_lea.vmem %s48_s18, 8192  ;;  %p2220_p6 = scmp.lt.s32.totalorder %s48_s18, %s48_s18 }
  0x2d   :  { %p2216_p5 = scmp.ne.s32.totalorder %s48_s18, %s2215_s14  ;;  %p2221_p7 = scmp.lt.s32.totalorder %s2215_s14, %s2215_s14 }
  0x2f   :  { %p2222_p8 = por %p2221_p7, %p2220_p6 }
  0x31   :  { %p2223_p9 = pnand %p2222_p8, %p2216_p5 }
  0x33   :  { %2226 = shalt.err (!%p2223_p9)
}
  0x34   :  { %53 = dma.hbm_to_vmem [thread:$0]  %s2475_s3, 8192, %s48_s18, [#allocation7], %s2304_s11, %s2304_s11, %s2305_s12  }
  0x35   :  { %s2308_s16 = smov [#allocation9]   ;;  %s2227_s21 = scalar_lea.hbm %s2476_s4, 1024 }
  0x36   :  { %s59_s17 = sshll.u32 %s2308_s16, 4  ;;  %p2228_p10 = scmp.ne.s32.totalorder %s2476_s4, %s2227_s21  ;;  %s60_s17 = int_to_ptr.vmem [resolvable:$true] %s59_s17 }
  0x37   :  { %p2231_p11 = scmp.lt.u32.totalorder %s2227_s21, %s2476_s4 }
  0x39   :  { %p2233_p12 = pnand %p2231_p11, %p2228_p10 }
  0x3b   :  { %2236 = shalt.err (!%p2233_p12)
}
  0x3c   :  { %s2237_s1 = scalar_lea.vmem %s60_s17, 1024  ;;  %p2242_p0 = scmp.lt.s32.totalorder %s60_s17, %s60_s17 }
  0x3d   :  { %p2238_p13 = scmp.ne.s32.totalorder %s60_s17, %s2237_s1  ;;  %p2243_p1 = scmp.lt.s32.totalorder %s2237_s1, %s2237_s1 }
  0x3f   :  { %p2244_p2 = por %p2243_p1, %p2242_p0 }
  0x41   :  { %p2245_p3 = pnand %p2244_p2, %p2238_p13 }
  0x43   :  { %2248 = shalt.err (!%p2245_p3)
}
  0x44   :  { %65 = dma.hbm_to_vmem [thread:$0]  %s2476_s4, 1024, %s60_s17, [#allocation10], %s2304_s11, %s2304_s11, %s2305_s12  }
  0x45   :  { %2293 = dma.done.wait [#allocation4], 512  }
  0x46   :  { %2294 = vsyncadd [#allocation4], 4294966784 }
  0x47   :  { %2295 = dma.done.wait [#allocation7], 16384  }
  0x48   :  { %2296 = vsyncadd [#allocation7], 4294950912 }
  0x49   :  { %2297 = dma.done.wait [#allocation10], 1024  }
  0x4a   :  { %2298 = vsyncadd [#allocation10], 4294966272  ;;  %v2017_v0 = vld [vmem:[#allocation6 + $0x40] sm:$0xff]   ;;  %v2021_v4 = vld [vmem:[#allocation6 + $0x48] sm:$0xff]   ;;  %vm2310_vm0 = vmmov 0  }
  0x4b   :  { %v2018_v1 = vld [vmem:[#allocation6 + $0xc0] sm:$0xff]   ;;  %1802 = vmatprep.subr.bf16.mxu0 %v2017_v0  ;;  %v2022_v5 = vld [vmem:[#allocation6 + $0xc8] sm:$0xff]   ;;  %v2025_v8 = vld [vmem:[#allocation6 + $0x50] sm:$0xff]  }
  0x4c   :  { %v2019_v2 = vld [vmem:[#allocation6] sm:$0xff]   ;;  %1824 = vmatprep.subr.bf16.mxu1 %v2018_v1  ;;  %v2023_v6 = vld [vmem:[#allocation6 + $0x8] sm:$0xff]   ;;  %v2026_v9 = vld [vmem:[#allocation6 + $0xd0] sm:$0xff]  }
  0x4d   :  { %v2020_v3 = vld [vmem:[#allocation6 + $0x80] sm:$0xff]   ;;  %1803 = vmatpush3.bf16.msra.mxu0 %v2019_v2  ;;  %v2024_v7 = vld [vmem:[#allocation6 + $0x88] sm:$0xff]   ;;  %v2027_v10 = vld [vmem:[#allocation6 + $0x10] sm:$0xff]  }
  0x4e   :  { %1825 = vmatpush3.bf16.msra.mxu1 %v2020_v3  ;;  %1804 = vmatprep.subr.bf16.mxu0 %v2021_v4  ;;  %v2028_v11 = vld [vmem:[#allocation6 + $0x90] sm:$0xff]   ;;  %v2029_v12 = vld [vmem:[#allocation6 + $0x58] sm:$0xff]   ;;  %v2033_v16 = vld [vmem:[#allocation6 + $0x60] sm:$0xff]  }
  0x4f   :  { %1826 = vmatprep.subr.bf16.mxu1 %v2022_v5  ;;  %v2030_v13 = vld [vmem:[#allocation6 + $0xd8] sm:$0xff]   ;;  %v2034_v17 = vld [vmem:[#allocation6 + $0xe0] sm:$0xff]   ;;  %v2037_v20 = vld [vmem:[#allocation6 + $0x68] sm:$0xff]  }
  0x50   :  { %v2031_v14 = vld [vmem:[#allocation6 + $0x18] sm:$0xff]   ;;  %v2035_v18 = vld [vmem:[#allocation6 + $0x20] sm:$0xff]   ;;  %v2038_v21 = vld [vmem:[#allocation6 + $0xe8] sm:$0xff]  }
  0x51   :  { %1805 = vmatpush3.bf16.msra.mxu0 %v2023_v6  ;;  %v2032_v15 = vld [vmem:[#allocation6 + $0x98] sm:$0xff]   ;;  %v2036_v19 = vld [vmem:[#allocation6 + $0xa0] sm:$0xff]   ;;  %v2039_v22 = vld [vmem:[#allocation6 + $0x28] sm:$0xff]  }
  0x52   :  { %1827 = vmatpush3.bf16.msra.mxu1 %v2024_v7  ;;  %1806 = vmatprep.subr.bf16.mxu0 %v2025_v8  ;;  %v2040_v23 = vld [vmem:[#allocation6 + $0xa8] sm:$0xff]   ;;  %v2041_v24 = vld [vmem:[#allocation6 + $0x70] sm:$0xff]   ;;  %v2045_v28 = vld [vmem:[#allocation6 + $0x78] sm:$0xff]  }
  0x53   :  { %1828 = vmatprep.subr.bf16.mxu1 %v2026_v9  ;;  %v2042_v25 = vld [vmem:[#allocation6 + $0xf0] sm:$0xff]   ;;  %v2046_v29 = vld [vmem:[#allocation6 + $0xf8] sm:$0xff]   ;;  %v85_v32 = vld [vmem:[#allocation3] sm:$0xff] }
  0x54   :  { %v2043_v26 = vld [vmem:[#allocation6 + $0x30] sm:$0xff]   ;;  %v2047_v30 = vld [vmem:[#allocation6 + $0x38] sm:$0xff]   ;;  %v86_v33 = vld [vmem:[#allocation3 + $0x8] sm:$0xff]  ;;  %v2410_v34 = vcombine.low %v85_v32, %v85_v32  ;;  %v2412_v35 = vcombine.high %v85_v32, %v85_v32 }
  0x55   :  { %1807 = vmatpush3.bf16.msra.mxu0 %v2027_v10  ;;  %v2044_v27 = vld [vmem:[#allocation6 + $0xb0] sm:$0xff]   ;;  %v2048_v31 = vld [vmem:[#allocation6 + $0xb8] sm:$0xff]   ;;  %v2414_v36 = vcombine.low %v86_v33, %v86_v33  ;;  %v2416_v37 = vcombine.high %v86_v33, %v86_v33  ;;  %v2053_v38 = vld [vmem:[#allocation6 + $0x140] sm:$0xff]  }
  0x56   :  { %1829 = vmatpush3.bf16.msra.mxu1 %v2028_v11  ;;  %1808 = vmatprep.subr.bf16.mxu0 %v2029_v12  ;;  %v2054_v39 = vld [vmem:[#allocation6 + $0x1c0] sm:$0xff]   ;;  %v2057_v42 = vld [vmem:[#allocation6 + $0x148] sm:$0xff]   ;;  %v2061_v46 = vld [vmem:[#allocation6 + $0x150] sm:$0xff]  }
  0x57   :  { %1830 = vmatprep.subr.bf16.mxu1 %v2030_v13  ;;  %668 = vmatprep.mubr.bf16.mxu0 %v2412_v35  ;;  %v2055_v40 = vld [vmem:[#allocation6 + $0x100] sm:$0xff]   ;;  %v2058_v43 = vld [vmem:[#allocation6 + $0x1c8] sm:$0xff]   ;;  %v2062_v47 = vld [vmem:[#allocation6 + $0x1d0] sm:$0xff]  }
  0x58   :  { %708 = vmatprep.mubr.bf16.mxu1 %v2416_v37  ;;  %v2056_v41 = vld [vmem:[#allocation6 + $0x180] sm:$0xff]   ;;  %v2059_v44 = vld [vmem:[#allocation6 + $0x108] sm:$0xff]   ;;  %v2063_v48 = vld [vmem:[#allocation6 + $0x110] sm:$0xff]  }
  0x59   :  { %1809 = vmatpush3.bf16.msra.mxu0 %v2031_v14  ;;  %v2060_v45 = vld [vmem:[#allocation6 + $0x188] sm:$0xff]   ;;  %v2064_v49 = vld [vmem:[#allocation6 + $0x190] sm:$0xff]   ;;  %v2065_v50 = vld [vmem:[#allocation6 + $0x158] sm:$0xff]  }
  0x5a   :  { %1831 = vmatpush3.bf16.msra.mxu1 %v2032_v15  ;;  %1810 = vmatprep.subr.bf16.mxu0 %v2033_v16  ;;  %v2066_v51 = vld [vmem:[#allocation6 + $0x1d8] sm:$0xff]   ;;  %v2069_v54 = vld [vmem:[#allocation6 + $0x160] sm:$0xff]   ;;  %v2073_v58 = vld [vmem:[#allocation6 + $0x168] sm:$0xff]   ;;  %v2309_v15 = vmov 0.0  }
  0x5b   :  { %1832 = vmatprep.subr.bf16.mxu1 %v2034_v17  ;;  %v2067_v52 = vld [vmem:[#allocation6 + $0x118] sm:$0xff]   ;;  %v2070_v55 = vld [vmem:[#allocation6 + $0x1e0] sm:$0xff]   ;;  %v2074_v59 = vld [vmem:[#allocation6 + $0x1e8] sm:$0xff]  }
  0x5c   :  { %v2068_v53 = vld [vmem:[#allocation6 + $0x198] sm:$0xff]   ;;  %v2071_v56 = vld [vmem:[#allocation6 + $0x120] sm:$0xff]   ;;  %v2075_v60 = vld [vmem:[#allocation6 + $0x128] sm:$0xff]  }
  0x5d   :  { %1811 = vmatpush3.bf16.msra.mxu0 %v2035_v18  ;;  %v2072_v57 = vld [vmem:[#allocation6 + $0x1a0] sm:$0xff]   ;;  %v2076_v61 = vld [vmem:[#allocation6 + $0x1a8] sm:$0xff]   ;;  %v2077_v62 = vld [vmem:[#allocation6 + $0x170] sm:$0xff]  }
  0x5e   :  { %1833 = vmatpush3.bf16.msra.mxu1 %v2036_v19  ;;  %1812 = vmatprep.subr.bf16.mxu0 %v2037_v20  ;;  %v2078_v63 = vld [vmem:[#allocation6 + $0x1f0] sm:$0xff]   ;;  %v2081_v2 = vld [vmem:[#allocation6 + $0x178] sm:$0xff]   ;;  %v2089_v12 = vld [vmem:[#allocation8 + $0x40] sm:$0xff]  }
  0x5f   :  { %1834 = vmatprep.subr.bf16.mxu1 %v2038_v21  ;;  %v2079_v0 = vld [vmem:[#allocation6 + $0x130] sm:$0xff]   ;;  %v2082_v3 = vld [vmem:[#allocation6 + $0x1f8] sm:$0xff]   ;;  %v2090_v13 = vld [vmem:[#allocation8] sm:$0xff]  }
  0x60   :  { %v2080_v1 = vld [vmem:[#allocation6 + $0x1b0] sm:$0xff]   ;;  %v2083_v4 = vld [vmem:[#allocation6 + $0x138] sm:$0xff]   ;;  %v2091_v14 = vld [vmem:[#allocation9] sm:$0xff]  }
  0x61   :  { %1813 = vmatpush3.bf16.msra.mxu0 %v2039_v22  ;;  %v2084_v5 = vld [vmem:[#allocation6 + $0x1b8] sm:$0xff]   ;;  %v87_v6 = vld [vmem:[#allocation3 + $0x10] sm:$0xff]  ;;  %v2092_v16 = vld [vmem:[#allocation8 + $0x48] sm:$0xff]  }
  0x62   :  { %1835 = vmatpush3.bf16.msra.mxu1 %v2040_v23  ;;  %1814 = vmatprep.subr.bf16.mxu0 %v2041_v24  ;;  %v2422_v7 = vcombine.low %v87_v6, %v87_v6  ;;  %v2424_v8 = vcombine.high %v87_v6, %v87_v6  ;;  %v88_v9 = vld [vmem:[#allocation3 + $0x18] sm:$0xff]  ;;  %v2094_v17 = vld [vmem:[#allocation9 + $0x8] sm:$0xff]   ;;  %v2095_v19 = vld [vmem:[#allocation8 + $0x50] sm:$0xff]  }
  0x63   :  { %1836 = vmatprep.subr.bf16.mxu1 %v2042_v25  ;;  %v2426_v10 = vcombine.low %v88_v9, %v88_v9  ;;  %v2428_v11 = vcombine.high %v88_v9, %v88_v9  ;;  %v2093_v18 = vld [vmem:[#allocation8 + $0x8] sm:$0xff]   ;;  %v2097_v20 = vld [vmem:[#allocation9 + $0x10] sm:$0xff]   ;;  %v2098_v22 = vld [vmem:[#allocation8 + $0x58] sm:$0xff]  }
  0x64   :  { %v2096_v21 = vld [vmem:[#allocation8 + $0x10] sm:$0xff]   ;;  %v2100_v23 = vld [vmem:[#allocation9 + $0x18] sm:$0xff]   ;;  %v2101_v25 = vld [vmem:[#allocation8 + $0x60] sm:$0xff]  }
  0x65   :  { %1815 = vmatpush3.bf16.msra.mxu0 %v2043_v26  ;;  %v2099_v24 = vld [vmem:[#allocation8 + $0x18] sm:$0xff]   ;;  %v2102_v26 = vld [vmem:[#allocation8 + $0x20] sm:$0xff]   ;;  %v2108_v32 = vld [vmem:[#allocation8 + $0x30] sm:$0xff]  }
  0x66   :  { %1837 = vmatpush3.bf16.msra.mxu1 %v2044_v27  ;;  %1816 = vmatprep.subr.bf16.mxu0 %v2045_v28  ;;  %v2103_v27 = vld [vmem:[#allocation9 + $0x20] sm:$0xff]   ;;  %v2104_v28 = vld [vmem:[#allocation8 + $0x68] sm:$0xff]   ;;  %v2109_v33 = vld [vmem:[#allocation9 + $0x30] sm:$0xff]  }
  0x67   :  { %1838 = vmatprep.subr.bf16.mxu1 %v2046_v29  ;;  %v2105_v29 = vld [vmem:[#allocation8 + $0x28] sm:$0xff]  }
  0x69   :  { %1817 = vmatpush3.bf16.msra.mxu0 %v2047_v30  ;;  %v2106_v30 = vld [vmem:[#allocation9 + $0x28] sm:$0xff]  }
  0x6a   :  { %1839 = vmatpush3.bf16.msra.mxu1 %v2048_v31  ;;  %1846 = vmatprep.subr.bf16.mxu0 %v2053_v38  ;;  %v2107_v31 = vld [vmem:[#allocation8 + $0x70] sm:$0xff]   ;;  %v2111_v38 = vld [vmem:[#allocation8 + $0x38] sm:$0xff]  }
  0x6b   :  { %1868 = vmatprep.subr.bf16.mxu1 %v2054_v39  ;;  %v2112_v39 = vld [vmem:[#allocation9 + $0x38] sm:$0xff]  }
  0x6c   :  { %669 = vmatmul.mubr.bf16.vlgmr.msra.gmra.mrb[0].mxu0 %v2410_v34 }
  0x6d   :  { %709 = vmatmul.mubr.bf16.vlgmr.msra.gmra.mrb[0].mxu1 %v2414_v36  ;;  %1847 = vmatpush3.bf16.msra.mxu0 %v2055_v40  ;;  %v2113_v40 = vld [vmem:[#allocation8 + $0xc0] sm:$0xff]  }
  0x6e   :  { %1869 = vmatpush3.bf16.msra.mxu1 %v2056_v41  ;;  %1848 = vmatprep.subr.bf16.mxu0 %v2057_v42  ;;  %v2115_v41 = vld [vmem:[#allocation8 + $0x140] sm:$0xff]  }
  0x6f   :  { %1870 = vmatprep.subr.bf16.mxu1 %v2058_v43  ;;  %748 = vmatprep.mubr.bf16.mxu0 %v2424_v8  ;;  %v2116_v42 = vld [vmem:[#allocation8 + $0x100] sm:$0xff]   ;;  %v2119_v43 = vld [vmem:[#allocation8 + $0x148] sm:$0xff]  }
  0x70   :  { %788 = vmatprep.mubr.bf16.mxu1 %v2428_v11 }
  0x71   :  { %1849 = vmatpush3.bf16.msra.mxu0 %v2059_v44  ;;  %v2120_v44 = vld [vmem:[#allocation8 + $0x108] sm:$0xff]  }
  0x72   :  { %1871 = vmatpush3.bf16.msra.mxu1 %v2060_v45  ;;  %1850 = vmatprep.subr.bf16.mxu0 %v2061_v46  ;;  %v2123_v45 = vld [vmem:[#allocation8 + $0x150] sm:$0xff]  }
  0x73   :  { %1872 = vmatprep.subr.bf16.mxu1 %v2062_v47  ;;  %v2124_v46 = vld [vmem:[#allocation8 + $0x110] sm:$0xff]   ;;  %v2127_v47 = vld [vmem:[#allocation8 + $0x158] sm:$0xff]  }
  0x75   :  { %1851 = vmatpush3.bf16.msra.mxu0 %v2063_v48  ;;  %v2128_v48 = vld [vmem:[#allocation8 + $0x118] sm:$0xff]  }
  0x76   :  { %1873 = vmatpush3.bf16.msra.mxu1 %v2064_v49  ;;  %1852 = vmatprep.subr.bf16.mxu0 %v2065_v50  ;;  %v2132_v49 = vld [vmem:[#allocation8 + $0x120] sm:$0xff]   ;;  %v2135_v50 = vld [vmem:[#allocation8 + $0x168] sm:$0xff]  }
  0x77   :  { %1874 = vmatprep.subr.bf16.mxu1 %v2066_v51  ;;  %v2136_v51 = vld [vmem:[#allocation8 + $0x128] sm:$0xff]  }
  0x79   :  { %1853 = vmatpush3.bf16.msra.mxu0 %v2067_v52  ;;  %v2139_v52 = vld [vmem:[#allocation8 + $0x170] sm:$0xff]  }
  0x7a   :  { %1875 = vmatpush3.bf16.msra.mxu1 %v2068_v53  ;;  %1854 = vmatprep.subr.bf16.mxu0 %v2069_v54  ;;  %v2140_v53 = vld [vmem:[#allocation8 + $0x130] sm:$0xff]   ;;  %v2143_v54 = vld [vmem:[#allocation8 + $0x178] sm:$0xff]  }
  0x7b   :  { %1876 = vmatprep.subr.bf16.mxu1 %v2070_v55  ;;  %v2144_v55 = vld [vmem:[#allocation8 + $0x138] sm:$0xff]  }
  0x7d   :  { %1855 = vmatpush3.bf16.msra.mxu0 %v2071_v56 }
  0x7e   :  { %1877 = vmatpush3.bf16.msra.mxu1 %v2072_v57  ;;  %1856 = vmatprep.subr.bf16.mxu0 %v2073_v58  ;;  %v1648_v58 = vld [vmem:[%s2474_s2] ss:$0 sm:$0xff]  ;;  %s2311_s2 = smov [#allocation11]  }
  0x7f   :  { %1878 = vmatprep.subr.bf16.mxu1 %v2074_v59  ;;  %s1623_s12 = sshll.u32 %s2311_s2, 4  ;;  %s1624_s12 = int_to_ptr.vmem [resolvable:$true] %s1623_s12 }
  0x80   :  { %s2249_s25 = scalar_lea.vmem %s1624_s12, 128  ;;  %p2254_p5 = scmp.lt.s32.totalorder %s1624_s12, %s1624_s12 }
  0x81   :  { %1857 = vmatpush3.bf16.msra.mxu0 %v2075_v60  ;;  %p2250_p4 = scmp.ne.s32.totalorder %s1624_s12, %s2249_s25  ;;  %p2255_p6 = scmp.lt.s32.totalorder %s2249_s25, %s2249_s25 }
  0x82   :  { %1879 = vmatpush3.bf16.msra.mxu1 %v2076_v61  ;;  %1858 = vmatprep.subr.bf16.mxu0 %v2077_v62 }
  0x83   :  { %1880 = vmatprep.subr.bf16.mxu1 %v2078_v63  ;;  %p2256_p7 = por %p2255_p6, %p2254_p5 }
  0x85   :  { %1859 = vmatpush3.bf16.msra.mxu0 %v2079_v0  ;;  %p2257_p8 = pnand %p2256_p7, %p2250_p4 }
  0x86   :  { %1881 = vmatpush3.bf16.msra.mxu1 %v2080_v1  ;;  %1860 = vmatprep.subr.bf16.mxu0 %v2081_v2 }
  0x87   :  { %1882 = vmatprep.subr.bf16.mxu1 %v2082_v3 }
  0x89   :  { %1861 = vmatpush3.bf16.msra.mxu0 %v2083_v4 }
  0x8a   :  { %1883 = vmatpush3.bf16.msra.mxu1 %v2084_v5  ;;  %1987 = vmatprep.subr.bf16.mxu0 %v2309_v15 }
  0x8b   :  { %1899 = vmatprep.subr.bf16.mxu1 %v2089_v12 }
  0x8c   :  { %749 = vmatmul.mubr.bf16.vlgmr.msra.gmra.mrb[4].mxu0 %v2422_v7 }
  0x8d   :  { %789 = vmatmul.mubr.bf16.vlgmr.msra.gmra.mrb[4].mxu1 %v2426_v10  ;;  %1988 = vmatpush3.bf16.msra.mxu0 %v2091_v14 }
  0x8e   :  { %1480 = vmatprep.mubr.bf16.mxu1 %v2412_v35  ;;  %1900 = vmatpush3.bf16.msra.mxu1 %v2090_v13  ;;  %v2110_v35 = vld [vmem:[#allocation8 + $0x78] sm:$0xff]  }
  0x8f   :  { %1989 = vmatprep.subr.bf16.mxu0 %v2309_v15  ;;  %1901 = vmatprep.subr.bf16.mxu1 %v2092_v16 }
  0x90   :  { %2003 = vmatprep.mubr.msk.bf16.mxu0 %vm2310_vm0, %v2309_v15 }
  0x91   :  { %1990 = vmatpush3.bf16.msra.mxu0 %v2094_v17 }
  0x92   :  { %1902 = vmatpush3.bf16.msra.mxu1 %v2093_v18  ;;  %1991 = vmatprep.subr.bf16.mxu0 %v2309_v15 }
  0x93   :  { %1903 = vmatprep.subr.bf16.mxu1 %v2095_v19 }
  0x95   :  { %1992 = vmatpush3.bf16.msra.mxu0 %v2097_v20  ;;  %v2114_v20 = vld [vmem:[#allocation8 + $0x80] sm:$0xff]  }
  0x96   :  { %1904 = vmatpush3.bf16.msra.mxu1 %v2096_v21  ;;  %1993 = vmatprep.subr.bf16.mxu0 %v2309_v15  ;;  %v2117_v21 = vld [vmem:[#allocation8 + $0xc8] sm:$0xff]  }
  0x97   :  { %1905 = vmatprep.subr.bf16.mxu1 %v2098_v22 }
  0x99   :  { %1994 = vmatpush3.bf16.msra.mxu0 %v2100_v23  ;;  %v2118_v23 = vld [vmem:[#allocation8 + $0x88] sm:$0xff]  }
  0x9a   :  { %1906 = vmatpush3.bf16.msra.mxu1 %v2099_v24  ;;  %1995 = vmatprep.subr.bf16.mxu0 %v2309_v15  ;;  %v2121_v24 = vld [vmem:[#allocation8 + $0xd0] sm:$0xff]  }
  0x9b   :  { %1907 = vmatprep.subr.bf16.mxu1 %v2101_v25  ;;  %v2122_v25 = vld [vmem:[#allocation8 + $0x90] sm:$0xff]  }
  0x9d   :  { %1996 = vmatpush3.bf16.msra.mxu0 %v2103_v27  ;;  %v2126_v27 = vld [vmem:[#allocation8 + $0x98] sm:$0xff]  }
  0x9e   :  { %1908 = vmatpush3.bf16.msra.mxu1 %v2102_v26  ;;  %1997 = vmatprep.subr.bf16.mxu0 %v2309_v15  ;;  %v2125_v26 = vld [vmem:[#allocation8 + $0xd8] sm:$0xff]  }
  0x9f   :  { %1909 = vmatprep.subr.bf16.mxu1 %v2104_v28  ;;  %v2129_v28 = vld [vmem:[#allocation8 + $0xe0] sm:$0xff]  }
  0xa1   :  { %1998 = vmatpush3.bf16.msra.mxu0 %v2106_v30  ;;  %v2133_v30 = vld [vmem:[#allocation8 + $0xe8] sm:$0xff]  }
  0xa2   :  { %1910 = vmatpush3.bf16.msra.mxu1 %v2105_v29  ;;  %1999 = vmatprep.subr.bf16.mxu0 %v2309_v15  ;;  %v2130_v29 = vld [vmem:[#allocation8 + $0xa0] sm:$0xff]  }
  0xa3   :  { %1911 = vmatprep.subr.bf16.mxu1 %v2107_v31  ;;  %v2134_v31 = vld [vmem:[#allocation8 + $0xa8] sm:$0xff]  }
  0xa5   :  { %2000 = vmatpush3.bf16.msra.mxu0 %v2109_v33  ;;  %v2141_v33 = vld [vmem:[#allocation8 + $0xf8] sm:$0xff]  }
  0xa6   :  { %1912 = vmatpush3.bf16.msra.mxu1 %v2108_v32  ;;  %2001 = vmatprep.subr.bf16.mxu0 %v2309_v15  ;;  %v2137_v32 = vld [vmem:[#allocation8 + $0xf0] sm:$0xff]  }
  0xa7   :  { %1913 = vmatprep.subr.bf16.mxu1 %v2110_v35  ;;  %v2142_v35 = vld [vmem:[#allocation8 + $0xb8] sm:$0xff]  }
  0xa9   :  { %2002 = vmatpush3.bf16.msra.mxu0 %v2112_v39  ;;  %v2146_v39 = vld [vmem:[#allocation8 + $0x180] sm:$0xff]  }
  0xaa   :  { %1914 = vmatpush3.bf16.msra.mxu1 %v2111_v38  ;;  %1921 = vmatprep.subr.bf16.mxu0 %v2113_v40  ;;  %v2145_v38 = vld [vmem:[#allocation8 + $0x1c0] sm:$0xff]   ;;  %v2147_v40 = vld [vmem:[#allocation8 + $0x1c8] sm:$0xff]  }
  0xab   :  { %1943 = vmatprep.subr.bf16.mxu1 %v2115_v41  ;;  %v2148_v41 = vld [vmem:[#allocation8 + $0x188] sm:$0xff]  }
  0xad   :  { %1481 = vmatmul.mubr.bf16.vlgmr.msra.gmra.mrb[8].mxu1 %v2410_v34  ;;  %v2131_v34 = vld [vmem:[#allocation8 + $0x160] sm:$0xff]  }
  0xae   :  { %1560 = vmatprep.mubr.bf16.mxu1 %v2424_v8  ;;  %1944 = vmatpush3.bf16.msra.mxu1 %v2116_v42  ;;  %v2149_v42 = vld [vmem:[#allocation8 + $0x1d0] sm:$0xff]  }
  0xaf   :  { %1945 = vmatprep.subr.bf16.mxu1 %v2119_v43  ;;  %v2150_v43 = vld [vmem:[#allocation8 + $0x190] sm:$0xff]  }
  0xb2   :  { %1946 = vmatpush3.bf16.msra.mxu1 %v2120_v44  ;;  %v2151_v44 = vld [vmem:[#allocation8 + $0x1d8] sm:$0xff]  }
  0xb3   :  { %1947 = vmatprep.subr.bf16.mxu1 %v2123_v45  ;;  %v2152_v45 = vld [vmem:[#allocation8 + $0x198] sm:$0xff]  }
  0xb6   :  { %1948 = vmatpush3.bf16.msra.mxu1 %v2124_v46  ;;  %v2153_v46 = vld [vmem:[#allocation8 + $0x1e0] sm:$0xff]  }
  0xb7   :  { %1949 = vmatprep.subr.bf16.mxu1 %v2127_v47  ;;  %v2154_v47 = vld [vmem:[#allocation8 + $0x1a0] sm:$0xff]  }
  0xba   :  { %1950 = vmatpush3.bf16.msra.mxu1 %v2128_v48  ;;  %v2155_v48 = vld [vmem:[#allocation8 + $0x1e8] sm:$0xff]  }
  0xbb   :  { %1951 = vmatprep.subr.bf16.mxu1 %v2131_v34  ;;  %v2157_v34 = vld [vmem:[#allocation8 + $0x1f0] sm:$0xff]  }
  0xbe   :  { %1952 = vmatpush3.bf16.msra.mxu1 %v2132_v49  ;;  %v2159_v49 = vld [vmem:[#allocation8 + $0x1f8] sm:$0xff]  }
  0xbf   :  { %1953 = vmatprep.subr.bf16.mxu1 %v2135_v50  ;;  %v2160_v50 = vld [vmem:[#allocation8 + $0x1b8] sm:$0xff]  }
  0xc2   :  { %1954 = vmatpush3.bf16.msra.mxu1 %v2136_v51 }
  0xc3   :  { %1955 = vmatprep.subr.bf16.mxu1 %v2139_v52 }
  0xc6   :  { %1956 = vmatpush3.bf16.msra.mxu1 %v2140_v53 }
  0xc7   :  { %1957 = vmatprep.subr.bf16.mxu1 %v2143_v54 }
  0xca   :  { %1958 = vmatpush3.bf16.msra.mxu1 %v2144_v55 }
  0xcd   :  { %1561 = vmatmul.mubr.bf16.vlgmr.msra.gmra.mrb[12].mxu1 %v2422_v7 }
 0x13f   :  { %v1818_v56 = vpop.f32.mrb[0].mxu0 }
 0x140   :  { %v1840_v57 = vpop.f32.mrb[0].mxu1  ;;  %v1819_v59 = vpop.f32.mrb[1].mxu0 }
 0x141   :  { %v1841_v60 = vpop.f32.mrb[1].mxu1  ;;  %v1820_v61 = vadd.f32 %v1819_v59, %v1818_v56  ;;  %v1821_v63 = vpop.f32.mrb[2].mxu0 }
 0x142   :  { %v1842_v62 = vadd.f32 %v1841_v60, %v1840_v57  ;;  %v1843_v0 = vpop.f32.mrb[2].mxu1  ;;  %v1822_v1 = vpop.f32.mrb[3].mxu0 }
 0x143   :  { %v1844_v2 = vpop.f32.mrb[3].mxu1  ;;  %v671_v3 = vadd.f32 %v1820_v61, %v1648_v58 }
 0x145   :  { %v711_v4 = vadd.f32 %v1842_v62, %v671_v3 }
 0x15f   :  { %v1862_v5 = vpop.f32.mrb[4].mxu0 }
 0x160   :  { %v1884_v6 = vpop.f32.mrb[4].mxu1  ;;  %v1863_v8 = vpop.f32.mrb[5].mxu0 }
 0x161   :  { %v1885_v7 = vpop.f32.mrb[5].mxu1  ;;  %v1864_v9 = vadd.f32 %v1863_v8, %v1862_v5  ;;  %v1865_v13 = vpop.f32.mrb[6].mxu0 }
 0x162   :  { %v1886_v12 = vadd.f32 %v1885_v7, %v1884_v6  ;;  %v1887_v14 = vpop.f32.mrb[6].mxu1  ;;  %v1866_v15 = vpop.f32.mrb[7].mxu0 }
 0x163   :  { %v1888_v16 = vpop.f32.mrb[7].mxu1  ;;  %v751_v17 = vadd.f32 %v1864_v9, %v711_v4 }
 0x165   :  { %v791_v18 = vadd.f32 %v1886_v12, %v751_v17 }
 0x167   :  { %v797_v19 = vpack.c.bf16 %v791_v18, %v791_v18  ;;  %796 = vst [vmem:[#allocation11] sm:$0xff] %v791_v18 }
 0x169   :  { %798 = vst [vmem:[#allocation2] sm:$0xf] %v797_v19 }
 0x170   :  { %v931_v22 = vld [vmem:[#allocation2] sm:$0xf] }
 0x171   :  { %2004 = vmatmul.mubr.bf16.vlgmr.msra.gmra.mrb[8].mxu0 %v931_v22 }
 0x172   :  { %1922 = vmatpush3.bf16.msra.mxu0 %v2114_v20  ;;  %1520 = vmatprep.mubr.bf16.mxu0 %v2416_v37  ;;  %v2138_v37 = vld [vmem:[#allocation8 + $0xb0] sm:$0xff]  }
 0x173   :  { %1923 = vmatprep.subr.bf16.mxu0 %v2117_v21 }
 0x176   :  { %1924 = vmatpush3.bf16.msra.mxu0 %v2118_v23 }
 0x177   :  { %1925 = vmatprep.subr.bf16.mxu0 %v2121_v24 }
 0x17a   :  { %1926 = vmatpush3.bf16.msra.mxu0 %v2122_v25 }
 0x17b   :  { %1927 = vmatprep.subr.bf16.mxu0 %v2125_v26 }
 0x17e   :  { %1928 = vmatpush3.bf16.msra.mxu0 %v2126_v27 }
 0x17f   :  { %1929 = vmatprep.subr.bf16.mxu0 %v2129_v28 }
 0x180   :  { %v1915_v51 = vpop.f32.mrb[8].mxu1 }
 0x181   :  { %v1916_v52 = vpop.f32.mrb[9].mxu1 }
 0x182   :  { %1930 = vmatpush3.bf16.msra.mxu0 %v2130_v29  ;;  %v1917_v53 = vadd.f32 %v1916_v52, %v1915_v51  ;;  %v1918_v54 = vpop.f32.mrb[10].mxu1 }
 0x183   :  { %1931 = vmatprep.subr.bf16.mxu0 %v2133_v30  ;;  %v1919_v55 = vpop.f32.mrb[11].mxu1 }
 0x186   :  { %1932 = vmatpush3.bf16.msra.mxu0 %v2134_v31 }
 0x187   :  { %1933 = vmatprep.subr.bf16.mxu0 %v2137_v32 }
 0x18a   :  { %1934 = vmatpush3.bf16.msra.mxu0 %v2138_v37 }
 0x18b   :  { %1935 = vmatprep.subr.bf16.mxu0 %v2141_v33 }
 0x18e   :  { %1936 = vmatpush3.bf16.msra.mxu0 %v2142_v35 }
 0x18f   :  { %1965 = vmatprep.subr.bf16.mxu0 %v2145_v38 }
 0x191   :  { %1521 = vmatmul.mubr.bf16.vlgmr.msra.gmra.mrb[12].mxu0 %v2414_v36  ;;  %v2156_v36 = vld [vmem:[#allocation8 + $0x1a8] sm:$0xff]  }
 0x192   :  { %1966 = vmatpush3.bf16.msra.mxu0 %v2146_v39  ;;  %1600 = vmatprep.mubr.bf16.mxu0 %v2428_v11  ;;  %v2158_v11 = vld [vmem:[#allocation8 + $0x1b0] sm:$0xff]  }
 0x193   :  { %1967 = vmatprep.subr.bf16.mxu0 %v2147_v40 }
 0x196   :  { %1968 = vmatpush3.bf16.msra.mxu0 %v2148_v41 }
 0x197   :  { %1969 = vmatprep.subr.bf16.mxu0 %v2149_v42 }
 0x19a   :  { %1970 = vmatpush3.bf16.msra.mxu0 %v2150_v43 }
 0x19b   :  { %1971 = vmatprep.subr.bf16.mxu0 %v2151_v44 }
 0x19e   :  { %1972 = vmatpush3.bf16.msra.mxu0 %v2152_v45 }
 0x19f   :  { %1973 = vmatprep.subr.bf16.mxu0 %v2153_v46 }
 0x1a0   :  { %v1959_v56 = vpop.f32.mrb[12].mxu1 }
 0x1a1   :  { %v1960_v57 = vpop.f32.mrb[13].mxu1 }
 0x1a2   :  { %1974 = vmatpush3.bf16.msra.mxu0 %v2154_v47  ;;  %v1961_v58 = vadd.f32 %v1960_v57, %v1959_v56  ;;  %v1962_v59 = vpop.f32.mrb[14].mxu1 }
 0x1a3   :  { %1975 = vmatprep.subr.bf16.mxu0 %v2155_v48  ;;  %v1963_v60 = vpop.f32.mrb[15].mxu1 }
 0x1a6   :  { %1976 = vmatpush3.bf16.msra.mxu0 %v2156_v36 }
 0x1a7   :  { %1977 = vmatprep.subr.bf16.mxu0 %v2157_v34 }
 0x1aa   :  { %1978 = vmatpush3.bf16.msra.mxu0 %v2158_v11 }
 0x1ab   :  { %1979 = vmatprep.subr.bf16.mxu0 %v2159_v49 }
 0x1ae   :  { %1980 = vmatpush3.bf16.msra.mxu0 %v2160_v50 }
 0x1b1   :  { %1601 = vmatmul.mubr.bf16.vlgmr.msra.gmra.mrb[16].mxu0 %v2426_v10 }
 0x1b2   :  { %2260 = shalt.err (!%p2257_p8)
}
 0x1b3   :  { %s2261_s29 = scalar_lea.hbm %s2478_s6, 128 }
 0x1b4   :  { %p2262_p9 = scmp.ne.s32.totalorder %s2478_s6, %s2261_s29  ;;  %p2265_p10 = scmp.lt.u32.totalorder %s2261_s29, %s2478_s6 }
 0x1b6   :  { %p2267_p11 = pnand %p2265_p10, %p2262_p9 }
 0x1b8   :  { %2270 = shalt.err (!%p2267_p11)
}
 0x1b9   :  { %1626 = dma.vmem_to_hbm [thread:$0]  %s1624_s12, 128, %s2478_s6, [#allocation5]   ;;  %v1801_v15 = vld [vmem:[%s2477_s5] ss:$0 sm:$0xff] }
 0x1ba   :  { %s2312_s6 = smov [#allocation12]  }
 0x1bb   :  { %s1633_s16 = sshll.u32 %s2312_s6, 4  ;;  %s1634_s16 = int_to_ptr.vmem [resolvable:$true] %s1633_s16 }
 0x1bc   :  { %s2271_s17 = scalar_lea.vmem %s1634_s16, 128  ;;  %p2276_p13 = scmp.lt.s32.totalorder %s1634_s16, %s1634_s16 }
 0x1bd   :  { %p2272_p12 = scmp.ne.s32.totalorder %s1634_s16, %s2271_s17  ;;  %p2277_p0 = scmp.lt.s32.totalorder %s2271_s17, %s2271_s17 }
 0x1bf   :  { %p2278_p1 = por %p2277_p0, %p2276_p13 }
 0x1c1   :  { %p2279_p2 = pnand %p2278_p1, %p2272_p12 }
 0x244   :  { %v1030_v10 = vpop.f32.mrb[8].mxu0 }
 0x245   :  { %v1483_v61 = vadd.f32 %v1917_v53, %v1030_v10  ;;  %v2005_v62 = vpop.f32.mrb[9].mxu0 }
 0x246   :  { %v1033_v63 = vpop.f32.mrb[10].mxu0 }
 0x247   :  { %v2006_v0 = vpop.f32.mrb[11].mxu0 }
 0x264   :  { %v1937_v1 = vpop.f32.mrb[12].mxu0 }
 0x265   :  { %v1938_v2 = vpop.f32.mrb[13].mxu0 }
 0x266   :  { %v1939_v3 = vadd.f32 %v1938_v2, %v1937_v1  ;;  %v1940_v4 = vpop.f32.mrb[14].mxu0 }
 0x267   :  { %v1941_v5 = vpop.f32.mrb[15].mxu0 }
 0x268   :  { %v1523_v6 = vadd.f32 %v1939_v3, %v1483_v61 }
 0x26a   :  { %v1563_v8 = vadd.f32 %v1961_v58, %v1523_v6 }
 0x284   :  { %v1981_v7 = vpop.f32.mrb[16].mxu0 }
 0x285   :  { %v1982_v9 = vpop.f32.mrb[17].mxu0 }
 0x286   :  { %v1983_v12 = vadd.f32 %v1982_v9, %v1981_v7  ;;  %v1984_v13 = vpop.f32.mrb[18].mxu0 }
 0x287   :  { %v1985_v14 = vpop.f32.mrb[19].mxu0 }
 0x288   :  { %v1603_v16 = vadd.f32 %v1983_v12, %v1563_v8 }
 0x28a   :  { %v1615_v17 = vadd.f32 %v1801_v15, %v1603_v16 }
 0x28c   :  { %1616 = vst [vmem:[#allocation12] sm:$0xff] %v1615_v17 }
 0x28d   :  { %2282 = shalt.err (!%p2279_p2)
}
 0x28e   :  { %s2283_s21 = scalar_lea.hbm %s2479_s7, 128 }
 0x28f   :  { %p2284_p3 = scmp.ne.s32.totalorder %s2479_s7, %s2283_s21  ;;  %p2287_p4 = scmp.lt.u32.totalorder %s2283_s21, %s2479_s7 }
 0x291   :  { %p2289_p5 = pnand %p2287_p4, %p2284_p3 }
 0x293   :  { %2292 = shalt.err (!%p2289_p5)
}
 0x294   :  { %1636 = dma.vmem_to_hbm [thread:$0]  %s1634_s16, 128, %s2479_s7, [#allocation13]  }
 0x295   :  { %2299 = dma.done.wait [#allocation5], 128  }
 0x296   :  { %2300 = vsyncadd [#allocation5], 4294967168 }
 0x297   :  { %2301 = dma.done.wait [#allocation13], 128  }
 0x298   :  { %2302 = vsyncadd [#allocation13], 4294967168 }
 0x299   :  { %1643 = vsyncpa [#allocation4], 1 }
 0x29a   :  { %1644 = vsyncpa [#allocation7], 1 }
 0x29b   :  { %1645 = vsyncpa [#allocation10], 1 }
 0x29c   :  { %1646 = vsyncpa [#allocation5], 1 }
 0x29d   :  { %1647 = vsyncpa [#allocation13], 1 }

</bundles_post_ra>
